<compile_context>
chip_gen: v5e
topology: v5e:2x2
jax: 0.10.0
libtpu: 0.0.40
codegen_flags: <defaults>
</compile_context>

<pallas_src>
import functools

import jax
import jax.numpy as jnp
from jax import lax
from jax.experimental import pallas as pl
from jax.experimental.pallas import tpu as pltpu


def _round_up(x, m):
    return (x + m - 1) // m * m


def _conv_out(n, k, s):
    return (n - k) // s + 1


@functools.lru_cache(maxsize=None)
def _vmem_limit_bytes():
    """Chip-aware scoped-VMEM cap: ~half of physical VMEM, clamped to
    [32MB, 96MB]  (v7x: 64MiB -> 32MB; v5e/v6e: 128MiB -> 64MB)."""
    cap = 128 * 1024 * 1024
    try:
        cap = int(pltpu.get_tpu_info().vmem_capacity_bytes)
    except Exception:
        pass
    return max(32 * 1024 * 1024, min(96 * 1024 * 1024, cap // 2))


def _pick_tile(m, tile_max):
    """Largest M tile <= tile_max that still yields >= 2 grid steps when
    possible (v7x shards the 'parallel' axis over its 2 TensorCores).
    Returns (padded extent, tile)."""
    mp = _round_up(max(m, 1), 8)
    if mp > 2 * tile_max:
        tm = tile_max
    else:
        tm = _round_up((mp + 1) // 2, 8)
    tm = max(8, min(tm, mp))
    mp = _round_up(mp, tm)
    return mp, tm


# ----------------------------------------------------------------------------
# Pallas kernel 1: tiled  out = relu?( x @ w + b )   (bf16 in/out, f32 acc)
# Used for conv1 / conv2 (as im2col matmuls).
# ----------------------------------------------------------------------------
def _matmul_bias_kernel(x_ref, w_ref, b_ref, o_ref, *, relu):
    acc = jnp.dot(x_ref[...], w_ref[...], preferred_element_type=jnp.float32)
    acc = acc + b_ref[...]                    # (1, Np) broadcasts over rows
    if relu:
        acc = jnp.maximum(acc, 0.0)
    o_ref[...] = acc.astype(o_ref.dtype)      # bf16, lane-dense (Np mult of 128)


def pallas_matmul_bias(x, w_pad, b_pad, *, relu, n_valid, tile_m=1024,
                       out_dtype=jnp.bfloat16):
    """x:(M,K) bf16/f32, w_pad:(Kp,Np) bf16 zero-padded, b_pad:(1,Np) f32.
    Returns (M, n_valid) in out_dtype.  M is padded and tiled over a parallel
    grid; K/N are padded/lane-aligned by the caller."""
    M, K = x.shape
    Kp, Np = w_pad.shape
    assert K <= Kp and b_pad.shape == (1, Np)

    Mp, tm = _pick_tile(M, tile_m)
    xp = jnp.zeros((Mp, Kp), jnp.bfloat16).at[:M, :K].set(x.astype(jnp.bfloat16))

    kernel = functools.partial(_matmul_bias_kernel, relu=relu)
    out = pl.pallas_call(
        kernel,
        out_shape=jax.ShapeDtypeStruct((Mp, Np), out_dtype),
        grid=(Mp // tm,),
        in_specs=[
            pl.BlockSpec((tm, Kp), lambda i: (i, 0)),
            pl.BlockSpec((Kp, Np), lambda i: (0, 0)),
            pl.BlockSpec((1, Np), lambda i: (0, 0)),
        ],
        out_specs=pl.BlockSpec((tm, Np), lambda i: (i, 0)),
        compiler_params=pltpu.CompilerParams(
            dimension_semantics=("parallel",),
            vmem_limit_bytes=_vmem_limit_bytes()),
        cost_estimate=pl.CostEstimate(
            flops=2 * Mp * Kp * Np,
            transcendentals=0,
            bytes_accessed=Mp * Kp * 2 + Kp * Np * 2 + Mp * Np * 2),
    )(xp, w_pad, b_pad)
    return out[:M, :n_valid]


# ----------------------------------------------------------------------------
# Pallas kernel 2: fused tail  conv3(+im2col in VMEM) -> flatten -> lin1 -> lin2
# Takes conv2's raw NHWC activation; patches never hit HBM.
# ----------------------------------------------------------------------------
def _fused_head_kernel(x_ref, w3_ref, b3_ref, w4_ref, b4_ref, w5_ref, b5_ref,
                       o_ref, *, kh, kw, oh, ow, cin):
    tb = x_ref.shape[0]
    s3 = oh * ow
    # conv3 as kh*kw shifted K=cin MXU dots over the full (tb*s3) row block:
    # patches are formed from static Ref slices in VMEM (no whole-block load,
    # no concat, no HBM im2col expansion).
    acc = jnp.zeros((tb * s3, 128), jnp.float32)
    for di in range(kh):
        for dj in range(kw):
            patch = x_ref[:, di:di + oh, dj:dj + ow, :]        # (tb, oh, ow, cin)
            patch = patch.reshape(tb * s3, cin)
            wk = w3_ref[(di * kw + dj) * cin:(di * kw + dj + 1) * cin, :]
            acc = acc + jnp.dot(patch, wk, preferred_element_type=jnp.float32)
    h = jnp.maximum(acc + b3_ref[...], 0.0).astype(jnp.bfloat16)   # (tb*s3, 128)
    # NHWC flatten (row b, column s*128 + c): single reshape, single lin1 dot.
    h = h.reshape(tb, s3 * 128)
    z = jnp.dot(h, w4_ref[...], preferred_element_type=jnp.float32) + b4_ref[...]
    z = jnp.maximum(z, 0.0).astype(jnp.bfloat16)
    q = jnp.dot(z, w5_ref[...], preferred_element_type=jnp.float32) + b5_ref[...]
    o_ref[...] = q.astype(o_ref.dtype)


def pallas_fused_head(x, pp, *, output_size, tile_b=128):
    """x: conv2 NHWC output (B, H2, W2, 64) bf16.  Returns (B, output_size) f32."""
    B, h2, w2, c2 = x.shape
    kh = kw = 3
    oh, ow = _conv_out(h2, kh, 1), _conv_out(w2, kw, 1)
    s3 = oh * ow
    Np_out = pp["l2_w"].shape[1]
    assert pp["l1_w"].shape == (s3 * 128, 512)

    Bp, tb = _pick_tile(B, tile_b)
    xp = jnp.zeros((Bp, h2, w2, c2), jnp.bfloat16).at[:B].set(
        x.astype(jnp.bfloat16))

    kernel = functools.partial(_fused_head_kernel, kh=kh, kw=kw, oh=oh, ow=ow,
                               cin=c2)
    w_bytes = (pp["c3_w"].size + pp["l1_w"].size + pp["l2_w"].size) * 2
    flops = 2 * Bp * (s3 * kh * kw * c2 * 128 + s3 * 128 * 512 + 512 * Np_out)
    out = pl.pallas_call(
        kernel,
        out_shape=jax.ShapeDtypeStruct((Bp, Np_out), jnp.float32),
        grid=(Bp // tb,),
        in_specs=[
            pl.BlockSpec((tb, h2, w2, c2), lambda i: (i, 0, 0, 0)),
            # TODO(synk): pipeline_mode=pl.Buffered(1) on these constant-index
            # weight specs would halve their VMEM footprint at Atari scale.
            pl.BlockSpec(pp["c3_w"].shape, lambda i: (0, 0)),
            pl.BlockSpec(pp["c3_b"].shape, lambda i: (0, 0)),
            pl.BlockSpec(pp["l1_w"].shape, lambda i: (0, 0)),
            pl.BlockSpec(pp["l1_b"].shape, lambda i: (0, 0)),
            pl.BlockSpec(pp["l2_w"].shape, lambda i: (0, 0)),
            pl.BlockSpec(pp["l2_b"].shape, lambda i: (0, 0)),
        ],
        out_specs=pl.BlockSpec((tb, Np_out), lambda i: (i, 0)),
        compiler_params=pltpu.CompilerParams(
            dimension_semantics=("parallel",),
            vmem_limit_bytes=_vmem_limit_bytes()),
        cost_estimate=pl.CostEstimate(
            flops=flops, transcendentals=0,
            bytes_accessed=Bp * h2 * w2 * c2 * 2 + w_bytes + Bp * Np_out * 4),
    )(xp, pp["c3_w"], pp["c3_b"], pp["l1_w"], pp["l1_b"], pp["l2_w"], pp["l2_b"])
    return out[:B, :output_size]


# ----------------------------------------------------------------------------
# NHWC im2col glue for conv1/conv2 (valid padding, no dilation), bf16.
# ----------------------------------------------------------------------------
def _im2col_nhwc(x, kh, kw, stride):
    """x:(B,H,W,C) -> (B, OH, OW, KH*KW*C); columns ordered (kh, kw, c) with c
    fastest, matching weights reshaped via w.transpose(2,3,1,0).reshape(-1,OC)."""
    B, H, W, C = x.shape
    oh = _conv_out(H, kh, stride)
    ow = _conv_out(W, kw, stride)
    cols = []
    for i in range(kh):
        for j in range(kw):
            cols.append(x[:, i:i + stride * oh:stride,
                            j:j + stride * ow:stride, :])     # (B, oh, ow, C)
    return jnp.concatenate(cols, axis=-1), oh, ow


def conv2d_relu_nhwc(x, w_pad, b_pad, oc, k, stride):
    B = x.shape[0]
    p, oh, ow = _im2col_nhwc(x, k, k, stride)
    p = p.reshape(B * oh * ow, -1)
    y = pallas_matmul_bias(p, w_pad, b_pad, relu=True, n_valid=oc)
    return y.reshape(B, oh, ow, oc)                           # bf16


# ----------------------------------------------------------------------------
# Parameters (PyTorch-like layout) + one-time Pallas-ready prep
# ----------------------------------------------------------------------------
def init_params(key, input_shape, output_size):
    c_in, h, w = input_shape
    ks = jax.random.split(key, 10)
    h1, w1 = _conv_out(h, 8, 4), _conv_out(w, 8, 4)
    h2, w2 = _conv_out(h1, 4, 2), _conv_out(w1, 4, 2)
    h3, w3 = _conv_out(h2, 3, 1), _conv_out(w2, 3, 1)
    linear_in = 128 * h3 * w3

    def init_w(k, shape, fan_in):
        return jax.random.normal(k, shape, jnp.float32) / jnp.sqrt(float(fan_in))

    return {
        "conv1_w": init_w(ks[0], (32, c_in, 8, 8), c_in * 64),
        "conv1_b": init_w(ks[1], (32,), c_in * 64),
        "conv2_w": init_w(ks[2], (64, 32, 4, 4), 32 * 16),
        "conv2_b": init_w(ks[3], (64,), 32 * 16),
        "conv3_w": init_w(ks[4], (128, 64, 3, 3), 64 * 9),
        "conv3_b": init_w(ks[5], (128,), 64 * 9),
        "lin1_w": init_w(ks[6], (linear_in, 512), linear_in),
        "lin1_b": init_w(ks[7], (512,), linear_in),
        "lin2_w": init_w(ks[8], (512, output_size), 512),
        "lin2_b": init_w(ks[9], (512, output_size)[1] and (output_size,), 512),
    }


def prepare_params(params):
    """One-time weight prep: NHWC-ordered im2col weight matrices (rows padded
    to a multiple of 8, out-channels padded to a multiple of 128), bf16;
    biases kept f32 as (1, Np); lin1 rows permuted from PyTorch NCHW-flatten
    order to NHWC-flatten order."""
    def pad2d(a, rp, cp, dtype):
        return jnp.zeros((rp, cp), dtype).at[:a.shape[0], :a.shape[1]].set(
            a.astype(dtype))

    def conv_w(wc):
        oc, c, kh, kw = wc.shape
        w2 = wc.transpose(2, 3, 1, 0).reshape(kh * kw * c, oc)   # (kh,kw,c) rows
        return pad2d(w2, _round_up(w2.shape[0], 8), _round_up(oc, 128),
                     jnp.bfloat16)

    def bias(b):
        return pad2d(b.reshape(1, -1), 1, _round_up(b.shape[0], 128),
                     jnp.float32)

    s3 = params["lin1_w"].shape[0] // 128        # conv3 spatial positions
    # PyTorch flatten is (C,H,W): row = c*S3 + s  ->  NHWC flatten: s*128 + c
    l1 = params["lin1_w"].reshape(128, s3, 512).transpose(1, 0, 2)
    l1 = l1.reshape(s3 * 128, 512)
    n_out = params["lin2_w"].shape[1]
    return {
        "c1_w": conv_w(params["conv1_w"]), "c1_b": bias(params["conv1_b"]),
        "c2_w": conv_w(params["conv2_w"]), "c2_b": bias(params["conv2_b"]),
        "c3_w": conv_w(params["conv3_w"]), "c3_b": bias(params["conv3_b"]),
        "l1_w": l1.astype(jnp.bfloat16),   "l1_b": bias(params["lin1_b"]),
        "l2_w": pad2d(params["lin2_w"], 512, _round_up(n_out, 128),
                      jnp.bfloat16),
        "l2_b": bias(params["lin2_b"]),
    }


# ----------------------------------------------------------------------------
# DeepQNetwork forward
# ----------------------------------------------------------------------------
@functools.partial(jax.jit, static_argnames=("output_size",))
def deepq_forward(pp, observation, output_size):
    """observation: (B, C, H, W) float32 (PyTorch layout) -> (B, output_size)."""
    x = observation.transpose(0, 2, 3, 1).astype(jnp.bfloat16)   # NCHW->NHWC once
    x = conv2d_relu_nhwc(x, pp["c1_w"], pp["c1_b"], 32, 8, 4)
    x = conv2d_relu_nhwc(x, pp["c2_w"], pp["c2_b"], 64, 4, 2)
    # TODO(synk): conv1/conv2 im2col is still XLA glue (now bf16); pulling it
    # in-kernel (as done for conv3 inside the fused head) would remove the
    # remaining HBM round trips for the patch matrices.
    return pallas_fused_head(x, pp, output_size=output_size)


# Pure-JAX f32 reference (no Pallas) for a correctness check.
def deepq_forward_ref(params, x):
    def conv(x, w, b, s):
        y = lax.conv_general_dilated(
            x, w, window_strides=(s, s), padding="VALID",
            dimension_numbers=("NCHW", "OIHW", "NCHW"))
        return jax.nn.relu(y + b[None, :, None, None])
    x = conv(x, params["conv1_w"], params["conv1_b"], 4)
    x = conv(x, params["conv2_w"], params["conv2_b"], 2)
    x = conv(x, params["conv3_w"], params["conv3_b"], 1)
    x = x.reshape(x.shape[0], -1)
    x = jax.nn.relu(x @ params["lin1_w"] + params["lin1_b"])
    return x @ params["lin2_w"] + params["lin2_b"]


if __name__ == "__main__":
    # Smallest valid spatial for the conv stack is 36 (conv3 output = 1x1x128).
    batch, c, h, w = 2, 4, 36, 36
    output_size = 6

    key = jax.random.PRNGKey(0)
    k_params, k_obs = jax.random.split(key)
    params = init_params(k_params, (c, h, w), output_size)
    pp = prepare_params(params)
    obs = jax.random.normal(k_obs, (batch, c, h, w), jnp.float32)

    q = deepq_forward(pp, obs, output_size=output_size)
    q = jax.block_until_ready(q)

    q_ref = deepq_forward_ref(params, obs)
    assert q.shape == (batch, output_size)
    # bf16 matmul inputs/intermediates with f32 accumulation -> loose tol.
    assert jnp.allclose(q, q_ref, atol=5e-2, rtol=5e-2), "mismatch vs reference"

    print("KERNEL_OK")
</pallas_src>

<mosaic_0001>
module attributes {stable_mosaic.version = 11 : i64} {
  func.func @_matmul_bias_kernel(%arg0: i32, %arg1: memref<64x256xbf16, #tpu.memory_space<vmem>>, %arg2: memref<256x128xbf16, #tpu.memory_space<vmem>>, %arg3: memref<1x128xf32, #tpu.memory_space<vmem>>, %arg4: memref<64x128xbf16, #tpu.memory_space<vmem>>) attributes {dimension_semantics = [#tpu.dimension_semantics<parallel>], iteration_bounds = array<i64: 2>, scalar_prefetch = 0 : i64, scratch_operands = 0 : i64, tpu.core_type = #tpu.core_type<tc>, window_params = [{transform_indices = @transform_0, window_bounds = array<i64: 64, 256>}, {pipeline_mode = #tpu.pipeline_mode<synchronous>, transform_indices = @transform_1, window_bounds = array<i64: 256, 128>}, {pipeline_mode = #tpu.pipeline_mode<synchronous>, transform_indices = @transform_2, window_bounds = array<i64: 1, 128>}, {transform_indices = @transform_3, window_bounds = array<i64: 64, 128>}]} {
    %c0 = arith.constant 0 : index
    %c0_0 = arith.constant 0 : index
    %0 = vector.load %arg1[%c0, %c0_0] : memref<64x256xbf16, #tpu.memory_space<vmem>>, vector<64x256xbf16>
    %c0_1 = arith.constant 0 : index
    %c0_2 = arith.constant 0 : index
    %1 = vector.load %arg2[%c0_1, %c0_2] : memref<256x128xbf16, #tpu.memory_space<vmem>>, vector<256x128xbf16>
    %cst = arith.constant dense<0.000000e+00> : vector<64x128xf32>
    %2 = tpu.matmul %0, %1, %cst {dimension_numbers = #tpu.dot_dimension_numbers<[1], [0], [0], [1], [0, 0, 1, 1], [], []>} : vector<64x256xbf16>, vector<256x128xbf16>, vector<64x128xf32> -> vector<64x128xf32>
    %c0_3 = arith.constant 0 : index
    %c0_4 = arith.constant 0 : index
    %3 = vector.load %arg3[%c0_3, %c0_4] : memref<1x128xf32, #tpu.memory_space<vmem>>, vector<1x128xf32>
    %4 = vector.broadcast %3 : vector<1x128xf32> to vector<64x128xf32>
    %5 = arith.addf %2, %4 : vector<64x128xf32>
    %cst_5 = arith.constant 0.000000e+00 : f32
    %6 = vector.broadcast %cst_5 : f32 to vector<64x128xf32>
    %7 = arith.maximumf %5, %6 : vector<64x128xf32>
    %8 = arith.truncf %7 : vector<64x128xf32> to vector<64x128xbf16>
    %c0_6 = arith.constant 0 : index
    %c0_7 = arith.constant 0 : index
    %9 = vector.load %arg4[%c0_6, %c0_7] : memref<64x128xbf16, #tpu.memory_space<vmem>>, vector<64x128xbf16>
    tpu.vector_store %arg4[%c0_6, %c0_7], %8 {strides = array<i32>} : memref<64x128xbf16, #tpu.memory_space<vmem>>, vector<64x128xbf16>,
    return
  }
  func.func @transform_0(%arg0: i32) -> (i32, i32) {
    %c0_i32 = arith.constant 0 : i32
    %c0_i32_0 = arith.constant 0 : i32
    return %arg0, %c0_i32 : i32, i32
  }
  func.func @transform_1(%arg0: i32) -> (i32, i32) {
    %c0_i32 = arith.constant 0 : i32
    %c0_i32_0 = arith.constant 0 : i32
    %c0_i32_1 = arith.constant 0 : i32
    return %c0_i32, %c0_i32_0 : i32, i32
  }
  func.func @transform_2(%arg0: i32) -> (i32, i32) {
    %c0_i32 = arith.constant 0 : i32
    %c0_i32_0 = arith.constant 0 : i32
    %c0_i32_1 = arith.constant 0 : i32
    return %c0_i32, %c0_i32_0 : i32, i32
  }
  func.func @transform_3(%arg0: i32) -> (i32, i32) {
    %c0_i32 = arith.constant 0 : i32
    %c0_i32_0 = arith.constant 0 : i32
    return %arg0, %c0_i32 : i32, i32
  }
}

module attributes {stable_mosaic.version = 11 : i64} {
  func.func @_matmul_bias_kernel(%arg0: i32, %arg1: memref<16x512xbf16, #tpu.memory_space<vmem>>, %arg2: memref<512x128xbf16, #tpu.memory_space<vmem>>, %arg3: memref<1x128xf32, #tpu.memory_space<vmem>>, %arg4: memref<16x128xbf16, #tpu.memory_space<vmem>>) attributes {dimension_semantics = [#tpu.dimension_semantics<parallel>], iteration_bounds = array<i64: 2>, scalar_prefetch = 0 : i64, scratch_operands = 0 : i64, tpu.core_type = #tpu.core_type<tc>, window_params = [{transform_indices = @transform_0, window_bounds = array<i64: 16, 512>}, {pipeline_mode = #tpu.pipeline_mode<synchronous>, transform_indices = @transform_1, window_bounds = array<i64: 512, 128>}, {pipeline_mode = #tpu.pipeline_mode<synchronous>, transform_indices = @transform_2, window_bounds = array<i64: 1, 128>}, {transform_indices = @transform_3, window_bounds = array<i64: 16, 128>}]} {
    %c0 = arith.constant 0 : index
    %c0_0 = arith.constant 0 : index
    %0 = vector.load %arg1[%c0, %c0_0] : memref<16x512xbf16, #tpu.memory_space<vmem>>, vector<16x512xbf16>
    %c0_1 = arith.constant 0 : index
    %c0_2 = arith.constant 0 : index
    %1 = vector.load %arg2[%c0_1, %c0_2] : memref<512x128xbf16, #tpu.memory_space<vmem>>, vector<512x128xbf16>
    %cst = arith.constant dense<0.000000e+00> : vector<16x128xf32>
    %2 = tpu.matmul %0, %1, %cst {dimension_numbers = #tpu.dot_dimension_numbers<[1], [0], [0], [1], [0, 0, 1, 1], [], []>} : vector<16x512xbf16>, vector<512x128xbf16>, vector<16x128xf32> -> vector<16x128xf32>
    %c0_3 = arith.constant 0 : index
    %c0_4 = arith.constant 0 : index
    %3 = vector.load %arg3[%c0_3, %c0_4] : memref<1x128xf32, #tpu.memory_space<vmem>>, vector<1x128xf32>
    %4 = vector.broadcast %3 : vector<1x128xf32> to vector<16x128xf32>
    %5 = arith.addf %2, %4 : vector<16x128xf32>
    %cst_5 = arith.constant 0.000000e+00 : f32
    %6 = vector.broadcast %cst_5 : f32 to vector<16x128xf32>
    %7 = arith.maximumf %5, %6 : vector<16x128xf32>
    %8 = arith.truncf %7 : vector<16x128xf32> to vector<16x128xbf16>
    %c0_6 = arith.constant 0 : index
    %c0_7 = arith.constant 0 : index
    %9 = vector.load %arg4[%c0_6, %c0_7] : memref<16x128xbf16, #tpu.memory_space<vmem>>, vector<16x128xbf16>
    tpu.vector_store %arg4[%c0_6, %c0_7], %8 {strides = array<i32>} : memref<16x128xbf16, #tpu.memory_space<vmem>>, vector<16x128xbf16>,
    return
  }
  func.func @transform_0(%arg0: i32) -> (i32, i32) {
    %c0_i32 = arith.constant 0 : i32
    %c0_i32_0 = arith.constant 0 : i32
    return %arg0, %c0_i32 : i32, i32
  }
  func.func @transform_1(%arg0: i32) -> (i32, i32) {
    %c0_i32 = arith.constant 0 : i32
    %c0_i32_0 = arith.constant 0 : i32
    %c0_i32_1 = arith.constant 0 : i32
    return %c0_i32, %c0_i32_0 : i32, i32
  }
  func.func @transform_2(%arg0: i32) -> (i32, i32) {
    %c0_i32 = arith.constant 0 : i32
    %c0_i32_0 = arith.constant 0 : i32
    %c0_i32_1 = arith.constant 0 : i32
    return %c0_i32, %c0_i32_0 : i32, i32
  }
  func.func @transform_3(%arg0: i32) -> (i32, i32) {
    %c0_i32 = arith.constant 0 : i32
    %c0_i32_0 = arith.constant 0 : i32
    return %arg0, %c0_i32 : i32, i32
  }
}

module attributes {stable_mosaic.version = 11 : i64} {
  func.func @_fused_head_kernel(%arg0: i32, %arg1: memref<8x3x3x64xbf16, #tpu.memory_space<vmem>>, %arg2: memref<576x128xbf16, #tpu.memory_space<vmem>>, %arg3: memref<1x128xf32, #tpu.memory_space<vmem>>, %arg4: memref<128x512xbf16, #tpu.memory_space<vmem>>, %arg5: memref<1x512xf32, #tpu.memory_space<vmem>>, %arg6: memref<512x128xbf16, #tpu.memory_space<vmem>>, %arg7: memref<1x128xf32, #tpu.memory_space<vmem>>, %arg8: memref<8x128xf32, #tpu.memory_space<vmem>>) attributes {dimension_semantics = [#tpu.dimension_semantics<parallel>], iteration_bounds = array<i64: 1>, scalar_prefetch = 0 : i64, scratch_operands = 0 : i64, tpu.core_type = #tpu.core_type<tc>, window_params = [{transform_indices = @transform_0, window_bounds = array<i64: 8, 3, 3, 64>}, {pipeline_mode = #tpu.pipeline_mode<synchronous>, transform_indices = @transform_1, window_bounds = array<i64: 576, 128>}, {pipeline_mode = #tpu.pipeline_mode<synchronous>, transform_indices = @transform_2, window_bounds = array<i64: 1, 128>}, {pipeline_mode = #tpu.pipeline_mode<synchronous>, transform_indices = @transform_3, window_bounds = array<i64: 128, 512>}, {pipeline_mode = #tpu.pipeline_mode<synchronous>, transform_indices = @transform_4, window_bounds = array<i64: 1, 512>}, {pipeline_mode = #tpu.pipeline_mode<synchronous>, transform_indices = @transform_5, window_bounds = array<i64: 512, 128>}, {pipeline_mode = #tpu.pipeline_mode<synchronous>, transform_indices = @transform_6, window_bounds = array<i64: 1, 128>}, {transform_indices = @transform_7, window_bounds = array<i64: 8, 128>}]} {
    %cst = arith.constant 0.000000e+00 : f32
    %0 = vector.broadcast %cst : f32 to vector<8x128xf32>
    %c0 = arith.constant 0 : index
    %c0_0 = arith.constant 0 : index
    %c0_1 = arith.constant 0 : index
    %c0_2 = arith.constant 0 : index
    %1 = vector.load %arg1[%c0, %c0_0, %c0_1, %c0_2] : memref<8x3x3x64xbf16, #tpu.memory_space<vmem>>, vector<8x1x1x64xbf16>
    %2 = vector.shape_cast %1 : vector<8x1x1x64xbf16> to vector<8x64xbf16>
    %c0_3 = arith.constant 0 : index
    %c0_4 = arith.constant 0 : index
    %3 = vector.load %arg2[%c0_3, %c0_4] : memref<576x128xbf16, #tpu.memory_space<vmem>>, vector<64x128xbf16>
    %cst_5 = arith.constant dense<0.000000e+00> : vector<8x128xf32>
    %4 = tpu.matmul %2, %3, %cst_5 {dimension_numbers = #tpu.dot_dimension_numbers<[1], [0], [0], [1], [0, 0, 1, 1], [], []>} : vector<8x64xbf16>, vector<64x128xbf16>, vector<8x128xf32> -> vector<8x128xf32>
    %5 = arith.addf %0, %4 : vector<8x128xf32>
    %c0_6 = arith.constant 0 : index
    %c0_7 = arith.constant 0 : index
    %c1 = arith.constant 1 : index
    %c0_8 = arith.constant 0 : index
    %6 = vector.load %arg1[%c0_6, %c0_7, %c1, %c0_8] : memref<8x3x3x64xbf16, #tpu.memory_space<vmem>>, vector<8x1x1x64xbf16>
    %7 = vector.shape_cast %6 : vector<8x1x1x64xbf16> to vector<8x64xbf16>
    %c64 = arith.constant 64 : index
    %c0_9 = arith.constant 0 : index
    %8 = vector.load %arg2[%c64, %c0_9] : memref<576x128xbf16, #tpu.memory_space<vmem>>, vector<64x128xbf16>
    %cst_10 = arith.constant dense<0.000000e+00> : vector<8x128xf32>
    %9 = tpu.matmul %7, %8, %cst_10 {dimension_numbers = #tpu.dot_dimension_numbers<[1], [0], [0], [1], [0, 0, 1, 1], [], []>} : vector<8x64xbf16>, vector<64x128xbf16>, vector<8x128xf32> -> vector<8x128xf32>
    %10 = arith.addf %5, %9 : vector<8x128xf32>
    %c0_11 = arith.constant 0 : index
    %c0_12 = arith.constant 0 : index
    %c2 = arith.constant 2 : index
    %c0_13 = arith.constant 0 : index
    %11 = vector.load %arg1[%c0_11, %c0_12, %c2, %c0_13] : memref<8x3x3x64xbf16, #tpu.memory_space<vmem>>, vector<8x1x1x64xbf16>
    %12 = vector.shape_cast %11 : vector<8x1x1x64xbf16> to vector<8x64xbf16>
    %c128 = arith.constant 128 : index
    %c0_14 = arith.constant 0 : index
    %13 = vector.load %arg2[%c128, %c0_14] : memref<576x128xbf16, #tpu.memory_space<vmem>>, vector<64x128xbf16>
    %cst_15 = arith.constant dense<0.000000e+00> : vector<8x128xf32>
    %14 = tpu.matmul %12, %13, %cst_15 {dimension_numbers = #tpu.dot_dimension_numbers<[1], [0], [0], [1], [0, 0, 1, 1], [], []>} : vector<8x64xbf16>, vector<64x128xbf16>, vector<8x128xf32> -> vector<8x128xf32>
    %15 = arith.addf %10, %14 : vector<8x128xf32>
    %c0_16 = arith.constant 0 : index
    %c1_17 = arith.constant 1 : index
    %c0_18 = arith.constant 0 : index
    %c0_19 = arith.constant 0 : index
    %16 = vector.load %arg1[%c0_16, %c1_17, %c0_18, %c0_19] : memref<8x3x3x64xbf16, #tpu.memory_space<vmem>>, vector<8x1x1x64xbf16>
    %17 = vector.shape_cast %16 : vector<8x1x1x64xbf16> to vector<8x64xbf16>
    %c192 = arith.constant 192 : index
    %c0_20 = arith.constant 0 : index
    %18 = vector.load %arg2[%c192, %c0_20] : memref<576x128xbf16, #tpu.memory_space<vmem>>, vector<64x128xbf16>
    %cst_21 = arith.constant dense<0.000000e+00> : vector<8x128xf32>
    %19 = tpu.matmul %17, %18, %cst_21 {dimension_numbers = #tpu.dot_dimension_numbers<[1], [0], [0], [1], [0, 0, 1, 1], [], []>} : vector<8x64xbf16>, vector<64x128xbf16>, vector<8x128xf32> -> vector<8x128xf32>
    %20 = arith.addf %15, %19 : vector<8x128xf32>
    %c0_22 = arith.constant 0 : index
    %c1_23 = arith.constant 1 : index
    %c1_24 = arith.constant 1 : index
    %c0_25 = arith.constant 0 : index
    %21 = vector.load %arg1[%c0_22, %c1_23, %c1_24, %c0_25] : memref<8x3x3x64xbf16, #tpu.memory_space<vmem>>, vector<8x1x1x64xbf16>
    %22 = vector.shape_cast %21 : vector<8x1x1x64xbf16> to vector<8x64xbf16>
    %c256 = arith.constant 256 : index
    %c0_26 = arith.constant 0 : index
    %23 = vector.load %arg2[%c256, %c0_26] : memref<576x128xbf16, #tpu.memory_space<vmem>>, vector<64x128xbf16>
    %cst_27 = arith.constant dense<0.000000e+00> : vector<8x128xf32>
    %24 = tpu.matmul %22, %23, %cst_27 {dimension_numbers = #tpu.dot_dimension_numbers<[1], [0], [0], [1], [0, 0, 1, 1], [], []>} : vector<8x64xbf16>, vector<64x128xbf16>, vector<8x128xf32> -> vector<8x128xf32>
    %25 = arith.addf %20, %24 : vector<8x128xf32>
    %c0_28 = arith.constant 0 : index
    %c1_29 = arith.constant 1 : index
    %c2_30 = arith.constant 2 : index
    %c0_31 = arith.constant 0 : index
    %26 = vector.load %arg1[%c0_28, %c1_29, %c2_30, %c0_31] : memref<8x3x3x64xbf16, #tpu.memory_space<vmem>>, vector<8x1x1x64xbf16>
    %27 = vector.shape_cast %26 : vector<8x1x1x64xbf16> to vector<8x64xbf16>
    %c320 = arith.constant 320 : index
    %c0_32 = arith.constant 0 : index
    %28 = vector.load %arg2[%c320, %c0_32] : memref<576x128xbf16, #tpu.memory_space<vmem>>, vector<64x128xbf16>
    %cst_33 = arith.constant dense<0.000000e+00> : vector<8x128xf32>
    %29 = tpu.matmul %27, %28, %cst_33 {dimension_numbers = #tpu.dot_dimension_numbers<[1], [0], [0], [1], [0, 0, 1, 1], [], []>} : vector<8x64xbf16>, vector<64x128xbf16>, vector<8x128xf32> -> vector<8x128xf32>
    %30 = arith.addf %25, %29 : vector<8x128xf32>
    %c0_34 = arith.constant 0 : index
    %c2_35 = arith.constant 2 : index
    %c0_36 = arith.constant 0 : index
    %c0_37 = arith.constant 0 : index
    %31 = vector.load %arg1[%c0_34, %c2_35, %c0_36, %c0_37] : memref<8x3x3x64xbf16, #tpu.memory_space<vmem>>, vector<8x1x1x64xbf16>
    %32 = vector.shape_cast %31 : vector<8x1x1x64xbf16> to vector<8x64xbf16>
    %c384 = arith.constant 384 : index
    %c0_38 = arith.constant 0 : index
    %33 = vector.load %arg2[%c384, %c0_38] : memref<576x128xbf16, #tpu.memory_space<vmem>>, vector<64x128xbf16>
    %cst_39 = arith.constant dense<0.000000e+00> : vector<8x128xf32>
    %34 = tpu.matmul %32, %33, %cst_39 {dimension_numbers = #tpu.dot_dimension_numbers<[1], [0], [0], [1], [0, 0, 1, 1], [], []>} : vector<8x64xbf16>, vector<64x128xbf16>, vector<8x128xf32> -> vector<8x128xf32>
    %35 = arith.addf %30, %34 : vector<8x128xf32>
    %c0_40 = arith.constant 0 : index
    %c2_41 = arith.constant 2 : index
    %c1_42 = arith.constant 1 : index
    %c0_43 = arith.constant 0 : index
    %36 = vector.load %arg1[%c0_40, %c2_41, %c1_42, %c0_43] : memref<8x3x3x64xbf16, #tpu.memory_space<vmem>>, vector<8x1x1x64xbf16>
    %37 = vector.shape_cast %36 : vector<8x1x1x64xbf16> to vector<8x64xbf16>
    %c448 = arith.constant 448 : index
    %c0_44 = arith.constant 0 : index
    %38 = vector.load %arg2[%c448, %c0_44] : memref<576x128xbf16, #tpu.memory_space<vmem>>, vector<64x128xbf16>
    %cst_45 = arith.constant dense<0.000000e+00> : vector<8x128xf32>
    %39 = tpu.matmul %37, %38, %cst_45 {dimension_numbers = #tpu.dot_dimension_numbers<[1], [0], [0], [1], [0, 0, 1, 1], [], []>} : vector<8x64xbf16>, vector<64x128xbf16>, vector<8x128xf32> -> vector<8x128xf32>
    %40 = arith.addf %35, %39 : vector<8x128xf32>
    %c0_46 = arith.constant 0 : index
    %c2_47 = arith.constant 2 : index
    %c2_48 = arith.constant 2 : index
    %c0_49 = arith.constant 0 : index
    %41 = vector.load %arg1[%c0_46, %c2_47, %c2_48, %c0_49] : memref<8x3x3x64xbf16, #tpu.memory_space<vmem>>, vector<8x1x1x64xbf16>
    %42 = vector.shape_cast %41 : vector<8x1x1x64xbf16> to vector<8x64xbf16>
    %c512 = arith.constant 512 : index
    %c0_50 = arith.constant 0 : index
    %43 = vector.load %arg2[%c512, %c0_50] : memref<576x128xbf16, #tpu.memory_space<vmem>>, vector<64x128xbf16>
    %cst_51 = arith.constant dense<0.000000e+00> : vector<8x128xf32>
    %44 = tpu.matmul %42, %43, %cst_51 {dimension_numbers = #tpu.dot_dimension_numbers<[1], [0], [0], [1], [0, 0, 1, 1], [], []>} : vector<8x64xbf16>, vector<64x128xbf16>, vector<8x128xf32> -> vector<8x128xf32>
    %45 = arith.addf %40, %44 : vector<8x128xf32>
    %c0_52 = arith.constant 0 : index
    %c0_53 = arith.constant 0 : index
    %46 = vector.load %arg3[%c0_52, %c0_53] : memref<1x128xf32, #tpu.memory_space<vmem>>, vector<1x128xf32>
    %47 = vector.broadcast %46 : vector<1x128xf32> to vector<8x128xf32>
    %48 = arith.addf %45, %47 : vector<8x128xf32>
    %cst_54 = arith.constant 0.000000e+00 : f32
    %49 = vector.broadcast %cst_54 : f32 to vector<8x128xf32>
    %50 = arith.maximumf %48, %49 : vector<8x128xf32>
    %51 = arith.truncf %50 : vector<8x128xf32> to vector<8x128xbf16>
    %c0_55 = arith.constant 0 : index
    %c0_56 = arith.constant 0 : index
    %52 = vector.load %arg4[%c0_55, %c0_56] : memref<128x512xbf16, #tpu.memory_space<vmem>>, vector<128x512xbf16>
    %cst_57 = arith.constant dense<0.000000e+00> : vector<8x512xf32>
    %53 = tpu.matmul %51, %52, %cst_57 {dimension_numbers = #tpu.dot_dimension_numbers<[1], [0], [0], [1], [0, 0, 1, 1], [], []>} : vector<8x128xbf16>, vector<128x512xbf16>, vector<8x512xf32> -> vector<8x512xf32>
    %c0_58 = arith.constant 0 : index
    %c0_59 = arith.constant 0 : index
    %54 = vector.load %arg5[%c0_58, %c0_59] : memref<1x512xf32, #tpu.memory_space<vmem>>, vector<1x512xf32>
    %55 = vector.broadcast %54 : vector<1x512xf32> to vector<8x512xf32>
    %56 = arith.addf %53, %55 : vector<8x512xf32>
    %cst_60 = arith.constant 0.000000e+00 : f32
    %57 = vector.broadcast %cst_60 : f32 to vector<8x512xf32>
    %58 = arith.maximumf %56, %57 : vector<8x512xf32>
    %59 = arith.truncf %58 : vector<8x512xf32> to vector<8x512xbf16>
    %c0_61 = arith.constant 0 : index
    %c0_62 = arith.constant 0 : index
    %60 = vector.load %arg6[%c0_61, %c0_62] : memref<512x128xbf16, #tpu.memory_space<vmem>>, vector<512x128xbf16>
    %cst_63 = arith.constant dense<0.000000e+00> : vector<8x128xf32>
    %61 = tpu.matmul %59, %60, %cst_63 {dimension_numbers = #tpu.dot_dimension_numbers<[1], [0], [0], [1], [0, 0, 1, 1], [], []>} : vector<8x512xbf16>, vector<512x128xbf16>, vector<8x128xf32> -> vector<8x128xf32>
    %c0_64 = arith.constant 0 : index
    %c0_65 = arith.constant 0 : index
    %62 = vector.load %arg7[%c0_64, %c0_65] : memref<1x128xf32, #tpu.memory_space<vmem>>, vector<1x128xf32>
    %63 = vector.broadcast %62 : vector<1x128xf32> to vector<8x128xf32>
    %64 = arith.addf %61, %63 : vector<8x128xf32>
    %c0_66 = arith.constant 0 : index
    %c0_67 = arith.constant 0 : index
    %65 = vector.load %arg8[%c0_66, %c0_67] : memref<8x128xf32, #tpu.memory_space<vmem>>, vector<8x128xf32>
    tpu.vector_store %arg8[%c0_66, %c0_67], %64 {strides = array<i32>} : memref<8x128xf32, #tpu.memory_space<vmem>>, vector<8x128xf32>,
    return
  }
  func.func @transform_0(%arg0: i32) -> (i32, i32, i32, i32) {
    %c0_i32 = arith.constant 0 : i32
    %c0_i32_0 = arith.constant 0 : i32
    %c0_i32_1 = arith.constant 0 : i32
    %c0_i32_2 = arith.constant 0 : i32
    return %arg0, %c0_i32, %c0_i32_0, %c0_i32_1 : i32, i32, i32, i32
  }
  func.func @transform_1(%arg0: i32) -> (i32, i32) {
    %c0_i32 = arith.constant 0 : i32
    %c0_i32_0 = arith.constant 0 : i32
    %c0_i32_1 = arith.constant 0 : i32
    return %c0_i32, %c0_i32_0 : i32, i32
  }
  func.func @transform_2(%arg0: i32) -> (i32, i32) {
    %c0_i32 = arith.constant 0 : i32
    %c0_i32_0 = arith.constant 0 : i32
    %c0_i32_1 = arith.constant 0 : i32
    return %c0_i32, %c0_i32_0 : i32, i32
  }
  func.func @transform_3(%arg0: i32) -> (i32, i32) {
    %c0_i32 = arith.constant 0 : i32
    %c0_i32_0 = arith.constant 0 : i32
    %c0_i32_1 = arith.constant 0 : i32
    return %c0_i32, %c0_i32_0 : i32, i32
  }
  func.func @transform_4(%arg0: i32) -> (i32, i32) {
    %c0_i32 = arith.constant 0 : i32
    %c0_i32_0 = arith.constant 0 : i32
    %c0_i32_1 = arith.constant 0 : i32
    return %c0_i32, %c0_i32_0 : i32, i32
  }
  func.func @transform_5(%arg0: i32) -> (i32, i32) {
    %c0_i32 = arith.constant 0 : i32
    %c0_i32_0 = arith.constant 0 : i32
    %c0_i32_1 = arith.constant 0 : i32
    return %c0_i32, %c0_i32_0 : i32, i32
  }
  func.func @transform_6(%arg0: i32) -> (i32, i32) {
    %c0_i32 = arith.constant 0 : i32
    %c0_i32_0 = arith.constant 0 : i32
    %c0_i32_1 = arith.constant 0 : i32
    return %c0_i32, %c0_i32_0 : i32, i32
  }
  func.func @transform_7(%arg0: i32) -> (i32, i32) {
    %c0_i32 = arith.constant 0 : i32
    %c0_i32_0 = arith.constant 0 : i32
    return %arg0, %c0_i32 : i32, i32
  }
}

</mosaic_0001>

<bundles_post_ra>
// kernel: deepq_forward.3
= control target key start
LH: loop header
LB: loop body
LE: loop exit
PB: predicated region body
PF: predicated region fallthrough
CT: control target
= control target key end

     0   :  { %s704_s12 = smov 0   ;;  %s800_s0 = inlined_call_operand.vmem [shape: bf16[128,256], index: 0, kind: input, shape index: {}]   ;;  %s801_s1 = inlined_call_operand.vmem [shape: bf16[256,128], index: 1, kind: input, shape index: {}]   ;;  %s802_s2 = inlined_call_operand.vmem [shape: f32[1,128], index: 2, kind: input, shape index: {}]   ;;  %s803_s3 = inlined_call_operand.vmem [shape: bf16[128,128], index: 3, kind: output, shape index: {}]  }
   0x1 LB: > { %s495_s13 = sadd.s32 4294967295, %s682_s12   ;;  %p499_p0 = scmp.ge.s32.totalorder %s682_s12, 1  ;;  %s682_s12 = sphi %s704_s12, %s13_s12  }
   0x2   : > { %p139_p1 = scmp.lt.s32.totalorder %s682_s12, 3 }
   0x4   : > { %p140_p2 = pnand %p499_p0, %p139_p1 }
   0x5   : > { %s500_s26 = sshll.u32 (!%p140_p2), %s495_s13, 3 }
   0x6   : > { %143 = sbr.rel (%p140_p2) target bundleno = 208 (0xd0), region = 32  ;;  %p165_p3 = scmp.lt.s32.totalorder (!%p140_p2), %s500_s26, 15 }
   0xb   : > { %v619_v0 = vld [vmem:[%s801_s1 + $0x38] sm:$0xff]  ;;  %v618_v2 = vld [vmem:[%s801_s1 + $0x30] sm:$0xff]  ;;  %v617_v4 = vld [vmem:[%s801_s1 + $0x28] sm:$0xff]  ;;  %s805_s26 = smov (!%p165_p3, %s500_s26), 15 }
   0xc   : > { %v627_v1 = vld [vmem:[%s801_s1 + $0x78] sm:$0xff]  ;;  %357 = vmatpush.bf16.msra.mxu0 %v619_v0  ;;  %651 = vmatpush.bf16.msra.mxu2 %v619_v0  ;;  %v626_v3 = vld [vmem:[%s801_s1 + $0x70] sm:$0xff]  ;;  %v625_v5 = vld [vmem:[%s801_s1 + $0x68] sm:$0xff]  ;;  %s603_s13 = sshll.u32 %s805_s26, 3  ;;  %s504_s28 = sshll.u32 %s805_s26, 2 }
   0xd   : > { %386 = vmatpush.bf16.msra.mxu1 %v627_v1  ;;  %659 = vmatpush.bf16.msra.mxu3 %v627_v1  ;;  %v616_v6 = vld [vmem:[%s801_s1 + $0x20] sm:$0xff]  ;;  %v615_v8 = vld [vmem:[%s801_s1 + $0x18] sm:$0xff]  ;;  %v614_v10 = vld [vmem:[%s801_s1 + $0x10] sm:$0xff]  ;;  %s757_s18 = scalar_lea.vmem %s800_s0, %s603_s13  ;;  %s791_s4 = scalar_lea.vmem %s803_s3, %s504_s28 }
   0xe   : > { %v624_v7 = vld [vmem:[%s801_s1 + $0x60] sm:$0xff]  ;;  %v623_v9 = vld [vmem:[%s801_s1 + $0x58] sm:$0xff]  ;;  %v622_v11 = vld [vmem:[%s801_s1 + $0x50] sm:$0xff] }
   0xf   : > { %v613_v12 = vld [vmem:[%s801_s1 + $0x8] sm:$0xff]  ;;  %v612_v14 = vld [vmem:[%s801_s1] sm:$0xff]  ;;  %v515_v28 = vld [vmem:[%s757_s18 + $0x10] sm:$0xf] }
  0x10   : > { %358 = vmatpush.bf16.msra.mxu0 %v618_v2  ;;  %652 = vmatpush.bf16.msra.mxu2 %v618_v2  ;;  %v621_v13 = vld [vmem:[%s801_s1 + $0x48] sm:$0xff]  ;;  %v620_v15 = vld [vmem:[%s801_s1 + $0x40] sm:$0xff]  ;;  %v607_v29 = vld [vmem:[%s757_s18 + $0x14] sm:$0xf0] }
  0x11   : > { %387 = vmatpush.bf16.msra.mxu1 %v626_v3  ;;  %660 = vmatpush.bf16.msra.mxu3 %v626_v3  ;;  %v507_v16 = vld [vmem:[%s757_s18] sm:$0xf]  ;;  %v605_v17 = vld [vmem:[%s757_s18 + $0x4] sm:$0xf0]  ;;  %v604_v20 = vld [vmem:[%s757_s18 + $0x4] sm:$0xf]  ;;  %v516_v36 = vor.u32 %v607_v29, %v515_v28 }
  0x12   : > { %v523_v18 = vld [vmem:[%s757_s18 + $0x20] sm:$0xf]  ;;  %v609_v19 = vld [vmem:[%s757_s18 + $0x24] sm:$0xf0]  ;;  %v509_v21 = vld [vmem:[%s757_s18 + $0x8] sm:$0xf0]  ;;  %v508_v24 = vor.u32 %v605_v17, %v507_v16 }
  0x13   : > { %v608_v22 = vld [vmem:[%s757_s18 + $0x24] sm:$0xf]  ;;  %v525_v23 = vld [vmem:[%s757_s18 + $0x28] sm:$0xf0]  ;;  %v524_v25 = vor.u32 %v609_v19, %v523_v18  ;;  %v512_v26 = vor.u32 %v604_v20, %v509_v21  ;;  %v531_v30 = vld [vmem:[%s757_s18 + $0x30] sm:$0xf] }
  0x14   : > { %359 = vmatpush.bf16.msra.mxu0 %v617_v4  ;;  %653 = vmatpush.bf16.msra.mxu2 %v617_v4  ;;  %v528_v27 = vor.u32 %v608_v22, %v525_v23  ;;  %v611_v31 = vld [vmem:[%s757_s18 + $0x34] sm:$0xf0]  ;;  %v606_v32 = vld [vmem:[%s757_s18 + $0x14] sm:$0xf]  ;;  %v517_v33 = vld [vmem:[%s757_s18 + $0x18] sm:$0xf0] }
  0x15   : > { %388 = vmatpush.bf16.msra.mxu1 %v625_v5  ;;  %661 = vmatpush.bf16.msra.mxu3 %v625_v5  ;;  %v610_v34 = vld [vmem:[%s757_s18 + $0x34] sm:$0xf]  ;;  %v533_v35 = vld [vmem:[%s757_s18 + $0x38] sm:$0xf0]  ;;  %v532_v37 = vor.u32 %v611_v31, %v531_v30  ;;  %v520_v38 = vor.u32 %v606_v32, %v517_v33  ;;  %v675_v41 = vld [vmem:[%s802_s2] ss:$0 sm:$0xff] }
  0x16   : > { %v536_v39 = vor.u32 %v610_v34, %v533_v35 }
  0x18   : > { %360 = vmatpush.bf16.msra.mxu0 %v616_v6  ;;  %654 = vmatpush.bf16.msra.mxu2 %v616_v6 }
  0x19   : > { %389 = vmatpush.bf16.msra.mxu1 %v624_v7  ;;  %662 = vmatpush.bf16.msra.mxu3 %v624_v7 }
  0x1c   : > { %361 = vmatpush.bf16.msra.mxu0 %v615_v8  ;;  %655 = vmatpush.bf16.msra.mxu2 %v615_v8 }
  0x1d   : > { %390 = vmatpush.bf16.msra.mxu1 %v623_v9  ;;  %663 = vmatpush.bf16.msra.mxu3 %v623_v9 }
  0x20   : > { %362 = vmatpush.bf16.msra.mxu0 %v614_v10  ;;  %656 = vmatpush.bf16.msra.mxu2 %v614_v10 }
  0x21   : > { %391 = vmatpush.bf16.msra.mxu1 %v622_v11  ;;  %664 = vmatpush.bf16.msra.mxu3 %v622_v11 }
  0x24   : > { %363 = vmatpush.bf16.msra.mxu0 %v613_v12  ;;  %657 = vmatpush.bf16.msra.mxu2 %v613_v12 }
  0x25   : > { %392 = vmatpush.bf16.msra.mxu1 %v621_v13  ;;  %665 = vmatpush.bf16.msra.mxu3 %v621_v13 }
  0x28   : > { %364 = vmatpush.bf16.msra.mxu0 %v612_v14  ;;  %658 = vmatpush.bf16.msra.mxu2 %v612_v14 }
  0x29   : > { %393 = vmatpush.bf16.msra.mxu1 %v620_v15  ;;  %666 = vmatpush.bf16.msra.mxu3 %v620_v15 }
  0x2b   : > { %365 = vmatmul.bf16.vlgmr.msra.gmra.mxu0 %v508_v24  ;;  %375 = vmatmul.bf16.vlgmr.msra.gmra.mxu2 %v524_v25 }
  0x2c   : > { %394 = vmatmul.bf16.vlgmr.msra.gmra.mxu1 %v512_v26  ;;  %404 = vmatmul.bf16.vlgmr.msra.gmra.mxu3 %v528_v27 }
  0x3b   : > { %370 = vmatmul.bf16.gmra.mxu0 %v516_v36  ;;  %380 = vmatmul.bf16.gmra.mxu2 %v532_v37 }
  0x3c   : > { %399 = vmatmul.bf16.gmra.mxu1 %v520_v38  ;;  %409 = vmatmul.bf16.gmra.mxu3 %v536_v39 }
  0xa8   : > { %v366_v40 = vpop.f32.mrf.mxu0 }
  0xa9   : > { %v395_v42 = vpop.f32.mrf.mxu1  ;;  %v367_v43 = vadd.f32 %v675_v41, %v366_v40 }
  0xab   : > { %v396_v47 = vadd.f32 %v395_v42, %v367_v43 }
  0xad   : > { %v415_v52 = vmax.f32 %v396_v47, 0.0 }
  0xae   : > { %v376_v44 = vpop.f32.mrf.mxu2 }
  0xaf   : > { %v405_v45 = vpop.f32.mrf.mxu3  ;;  %v377_v50 = vadd.f32 %v675_v41, %v376_v44 }
  0xb0   : > { %v368_v46 = vpop.f32.mrf.mxu0 }
  0xb1   : > { %v369_v48 = vadd.f32 %v675_v41, %v368_v46  ;;  %v397_v49 = vpop.f32.mrf.mxu1  ;;  %v406_v55 = vadd.f32 %v405_v45, %v377_v50 }
  0xb3   : > { %v398_v51 = vadd.f32 %v397_v49, %v369_v48  ;;  %v419_v62 = vmax.f32 %v406_v55, 0.0 }
  0xb5   : > { %v416_v53 = vmax.f32 %v398_v51, 0.0 }
  0xb6   : > { %v378_v54 = vpop.f32.mrf.mxu2 }
  0xb7   : > { %v631_v56 = vpack.c.bf16 %v416_v53, %v415_v52  ;;  %v379_v57 = vadd.f32 %v675_v41, %v378_v54  ;;  %v407_v58 = vpop.f32.mrf.mxu3 }
  0xb8   : > { %v371_v59 = vpop.f32.mrf.mxu0 }
  0xb9   : > { %632 = vst [vmem:[%s791_s4] sm:$0xff] %v631_v56   ;;  %v408_v60 = vadd.f32 %v407_v58, %v379_v57  ;;  %v400_v61 = vpop.f32.mrf.mxu1  ;;  %v372_v1 = vadd.f32 %v675_v41, %v371_v59 }
  0xbb   : > { %v420_v63 = vmax.f32 %v408_v60, 0.0  ;;  %v401_v5 = vadd.f32 %v400_v61, %v372_v1 }
  0xbd   : > { %v641_v0 = vpack.c.bf16 %v420_v63, %v419_v62  ;;  %v417_v10 = vmax.f32 %v401_v5, 0.0 }
  0xbe   : > { %v381_v2 = vpop.f32.mrf.mxu2 }
  0xbf   : > { %649 = vst [vmem:[%s791_s4 + $0x10] sm:$0xff] %v641_v0   ;;  %v410_v3 = vpop.f32.mrf.mxu3  ;;  %v382_v8 = vadd.f32 %v675_v41, %v381_v2 }
  0xc0   : > { %v373_v4 = vpop.f32.mrf.mxu0 }
  0xc1   : > { %v374_v6 = vadd.f32 %v675_v41, %v373_v4  ;;  %v402_v7 = vpop.f32.mrf.mxu1  ;;  %v411_v13 = vadd.f32 %v410_v3, %v382_v8 }
  0xc3   : > { %v403_v9 = vadd.f32 %v402_v7, %v374_v6  ;;  %v421_v18 = vmax.f32 %v411_v13, 0.0 }
  0xc5   : > { %v418_v11 = vmax.f32 %v403_v9, 0.0 }
  0xc6   : > { %v383_v12 = vpop.f32.mrf.mxu2 }
  0xc7   : > { %v636_v14 = vpack.c.bf16 %v418_v11, %v417_v10  ;;  %v384_v15 = vadd.f32 %v675_v41, %v383_v12  ;;  %v412_v16 = vpop.f32.mrf.mxu3 }
  0xc9   : > { %648 = vst [vmem:[%s791_s4 + $0x8] sm:$0xff] %v636_v14   ;;  %v413_v17 = vadd.f32 %v412_v16, %v384_v15 }
  0xcb   : > { %v422_v19 = vmax.f32 %v413_v17, 0.0 }
  0xcd   : > { %v646_v20 = vpack.c.bf16 %v422_v19, %v421_v18 }
  0xcf   : > { %650 = vst [vmem:[%s791_s4 + $0x18] sm:$0xff] %v646_v20  }
  0xd0 PF: > { %s13_s12 = sadd.s32 1, %s682_s12  }
  0xd1   : > { %p10_p4 = scmp.ge.s32.totalorder %s13_s12, 4  }
  0xd3   :  { %12 = sbr.rel (!%p10_p4) target bundleno = 1 (0x1), region = 62 }

// kernel: deepq_forward.4
= control target key start
LH: loop header
LB: loop body
LE: loop exit
PB: predicated region body
PF: predicated region fallthrough
CT: control target
= control target key end

     0   :  { %s814_s12 = smov 0   ;;  %s934_s0 = inlined_call_operand.vmem [shape: bf16[32,512], index: 0, kind: input, shape index: {}]   ;;  %s935_s1 = inlined_call_operand.vmem [shape: bf16[512,128], index: 1, kind: input, shape index: {}]   ;;  %s936_s2 = inlined_call_operand.vmem [shape: f32[1,128], index: 2, kind: input, shape index: {}]   ;;  %s937_s3 = inlined_call_operand.vmem [shape: bf16[32,128], index: 3, kind: output, shape index: {}]  }
   0x1 LB: > { %s579_s13 = sadd.s32 4294967295, %s792_s12   ;;  %p583_p0 = scmp.ge.s32.totalorder %s792_s12, 1  ;;  %s792_s12 = sphi %s814_s12, %s13_s12  }
   0x2   : > { %p139_p1 = scmp.lt.s32.totalorder %s792_s12, 3 }
   0x4   : > { %p140_p2 = pnand %p583_p0, %p139_p1 }
   0x5   : > { %s584_s11 = sshll.u32 (!%p140_p2), %s579_s13, 1 }
   0x6   : > { %143 = sbr.rel (%p140_p2) target bundleno = 194 (0xc2), region = 32  ;;  %p165_p3 = scmp.lt.s32.totalorder (!%p140_p2), %s584_s11, 3 }
   0xb   : > { %v747_v0 = vld [vmem:[%s935_s1 + $0x38] sm:$0xff]  ;;  %v746_v4 = vld [vmem:[%s935_s1 + $0x30] sm:$0xff]  ;;  %v745_v8 = vld [vmem:[%s935_s1 + $0x28] sm:$0xff]  ;;  %s939_s11 = smov (!%p165_p3, %s584_s11), 3 }
   0xc   : > { %v755_v1 = vld [vmem:[%s935_s1 + $0x78] sm:$0xff]  ;;  %461 = vmatpush.bf16.msra.mxu0 %v747_v0  ;;  %v754_v5 = vld [vmem:[%s935_s1 + $0x70] sm:$0xff]  ;;  %v753_v9 = vld [vmem:[%s935_s1 + $0x68] sm:$0xff]  ;;  %s735_s10 = sshll.u32 %s939_s11, 4  ;;  %s588_s7 = sshll.u32 %s939_s11, 2 }
   0xd   : > { %v763_v2 = vld [vmem:[%s935_s1 + $0xb8] sm:$0xff]  ;;  %475 = vmatpush.bf16.msra.mxu1 %v755_v1  ;;  %v762_v6 = vld [vmem:[%s935_s1 + $0xb0] sm:$0xff]  ;;  %v761_v10 = vld [vmem:[%s935_s1 + $0xa8] sm:$0xff]  ;;  %s169_s20 = scalar_lea.vmem %s934_s0, %s735_s10  ;;  %s175_s10 = scalar_lea.vmem %s937_s3, %s588_s7 }
   0xe   : > { %v771_v3 = vld [vmem:[%s935_s1 + $0xf8] sm:$0xff]  ;;  %489 = vmatpush.bf16.msra.mxu2 %v763_v2  ;;  %v770_v7 = vld [vmem:[%s935_s1 + $0xf0] sm:$0xff]  ;;  %v769_v11 = vld [vmem:[%s935_s1 + $0xe8] sm:$0xff] }
   0xf   : > { %503 = vmatpush.bf16.msra.mxu3 %v771_v3  ;;  %v744_v12 = vld [vmem:[%s935_s1 + $0x20] sm:$0xff]  ;;  %v743_v16 = vld [vmem:[%s935_s1 + $0x18] sm:$0xff]  ;;  %v742_v20 = vld [vmem:[%s935_s1 + $0x10] sm:$0xff] }
  0x10   : > { %462 = vmatpush.bf16.msra.mxu0 %v746_v4  ;;  %v752_v13 = vld [vmem:[%s935_s1 + $0x60] sm:$0xff]  ;;  %v751_v17 = vld [vmem:[%s935_s1 + $0x58] sm:$0xff]  ;;  %v750_v21 = vld [vmem:[%s935_s1 + $0x50] sm:$0xff] }
  0x11   : > { %476 = vmatpush.bf16.msra.mxu1 %v754_v5  ;;  %v760_v14 = vld [vmem:[%s935_s1 + $0xa0] sm:$0xff]  ;;  %v759_v18 = vld [vmem:[%s935_s1 + $0x98] sm:$0xff]  ;;  %v758_v22 = vld [vmem:[%s935_s1 + $0x90] sm:$0xff] }
  0x12   : > { %490 = vmatpush.bf16.msra.mxu2 %v762_v6  ;;  %v768_v15 = vld [vmem:[%s935_s1 + $0xe0] sm:$0xff]  ;;  %v767_v19 = vld [vmem:[%s935_s1 + $0xd8] sm:$0xff]  ;;  %v766_v23 = vld [vmem:[%s935_s1 + $0xd0] sm:$0xff] }
  0x13   : > { %504 = vmatpush.bf16.msra.mxu3 %v770_v7  ;;  %v741_v24 = vld [vmem:[%s935_s1 + $0x8] sm:$0xff]  ;;  %v740_v28 = vld [vmem:[%s935_s1] sm:$0xff]  ;;  %v738_v33 = vld [vmem:[%s169_s20 + $0xc] sm:$0xf0] }
  0x14   : > { %463 = vmatpush.bf16.msra.mxu0 %v745_v8  ;;  %v749_v25 = vld [vmem:[%s935_s1 + $0x48] sm:$0xff]  ;;  %v748_v29 = vld [vmem:[%s935_s1 + $0x40] sm:$0xff]  ;;  %v593_v35 = vld [vmem:[%s169_s20 + $0x10] sm:$0xf0] }
  0x15   : > { %477 = vmatpush.bf16.msra.mxu1 %v753_v9  ;;  %v757_v26 = vld [vmem:[%s935_s1 + $0x88] sm:$0xff]  ;;  %v756_v30 = vld [vmem:[%s935_s1 + $0x80] sm:$0xff]  ;;  %v739_v37 = vld [vmem:[%s169_s20 + $0x14] sm:$0xf0] }
  0x16   : > { %491 = vmatpush.bf16.msra.mxu2 %v761_v10  ;;  %v765_v27 = vld [vmem:[%s935_s1 + $0xc8] sm:$0xff]  ;;  %v764_v31 = vld [vmem:[%s935_s1 + $0xc0] sm:$0xff]  ;;  %v601_v39 = vld [vmem:[%s169_s20 + $0x18] sm:$0xf0] }
  0x17   : > { %505 = vmatpush.bf16.msra.mxu3 %v769_v11  ;;  %v591_v32 = vld [vmem:[%s169_s20] sm:$0xf]  ;;  %v736_v34 = vld [vmem:[%s169_s20 + $0x4] sm:$0xf]  ;;  %v599_v36 = vld [vmem:[%s169_s20 + $0x8] sm:$0xf] }
  0x18   : > { %464 = vmatpush.bf16.msra.mxu0 %v744_v12  ;;  %v737_v38 = vld [vmem:[%s169_s20 + $0xc] sm:$0xf]  ;;  %v592_v40 = vor.u32 %v738_v33, %v591_v32  ;;  %v596_v41 = vor.u32 %v736_v34, %v593_v35  ;;  %v600_v42 = vor.u32 %v739_v37, %v599_v36  ;;  %v785_v44 = vld [vmem:[%s936_s2] ss:$0 sm:$0xff] }
  0x19   : > { %478 = vmatpush.bf16.msra.mxu1 %v752_v13  ;;  %v604_v43 = vor.u32 %v737_v38, %v601_v39 }
  0x1a   : > { %492 = vmatpush.bf16.msra.mxu2 %v760_v14 }
  0x1b   : > { %506 = vmatpush.bf16.msra.mxu3 %v768_v15 }
  0x1c   : > { %465 = vmatpush.bf16.msra.mxu0 %v743_v16 }
  0x1d   : > { %479 = vmatpush.bf16.msra.mxu1 %v751_v17 }
  0x1e   : > { %493 = vmatpush.bf16.msra.mxu2 %v759_v18 }
  0x1f   : > { %507 = vmatpush.bf16.msra.mxu3 %v767_v19 }
  0x20   : > { %466 = vmatpush.bf16.msra.mxu0 %v742_v20 }
  0x21   : > { %480 = vmatpush.bf16.msra.mxu1 %v750_v21 }
  0x22   : > { %494 = vmatpush.bf16.msra.mxu2 %v758_v22 }
  0x23   : > { %508 = vmatpush.bf16.msra.mxu3 %v766_v23 }
  0x24   : > { %467 = vmatpush.bf16.msra.mxu0 %v741_v24 }
  0x25   : > { %481 = vmatpush.bf16.msra.mxu1 %v749_v25 }
  0x26   : > { %495 = vmatpush.bf16.msra.mxu2 %v757_v26 }
  0x27   : > { %509 = vmatpush.bf16.msra.mxu3 %v765_v27 }
  0x28   : > { %468 = vmatpush.bf16.msra.mxu0 %v740_v28 }
  0x29   : > { %482 = vmatpush.bf16.msra.mxu1 %v748_v29 }
  0x2a   : > { %496 = vmatpush.bf16.msra.mxu2 %v756_v30 }
  0x2b   : > { %510 = vmatpush.bf16.msra.mxu3 %v764_v31  ;;  %469 = vmatmul.bf16.vlgmr.msra.gmra.mxu0 %v592_v40 }
  0x2c   : > { %483 = vmatmul.bf16.vlgmr.msra.gmra.mxu1 %v596_v41 }
  0x2d   : > { %497 = vmatmul.bf16.vlgmr.msra.gmra.mxu2 %v600_v42 }
  0x2e   : > { %511 = vmatmul.bf16.vlgmr.msra.gmra.mxu3 %v604_v43 }
  0xa8   : > { %v470_v45 = vpop.f32.mrf.mxu0 }
  0xa9   : > { %v484_v46 = vpop.f32.mrf.mxu1  ;;  %v471_v47 = vadd.f32 %v785_v44, %v470_v45 }
  0xab   : > { %v485_v50 = vadd.f32 %v484_v46, %v471_v47 }
  0xb0   : > { %v498_v48 = vpop.f32.mrf.mxu2  ;;  %v472_v51 = vpop.f32.mrf.mxu0 }
  0xb1   : > { %v512_v49 = vpop.f32.mrf.mxu3  ;;  %v473_v52 = vadd.f32 %v785_v44, %v472_v51  ;;  %v499_v53 = vadd.f32 %v498_v48, %v485_v50  ;;  %v486_v54 = vpop.f32.mrf.mxu1 }
  0xb3   : > { %v487_v55 = vadd.f32 %v486_v54, %v473_v52  ;;  %v513_v57 = vadd.f32 %v512_v49, %v499_v53 }
  0xb5   : > { %v517_v61 = vmax.f32 %v513_v57, 0.0 }
  0xb8   : > { %v500_v56 = vpop.f32.mrf.mxu2 }
  0xb9   : > { %v501_v58 = vadd.f32 %v500_v56, %v487_v55  ;;  %v514_v59 = vpop.f32.mrf.mxu3 }
  0xbb   : > { %v515_v60 = vadd.f32 %v514_v59, %v501_v58 }
  0xbd   : > { %v518_v62 = vmax.f32 %v515_v60, 0.0 }
  0xbf   : > { %v775_v63 = vpack.c.bf16 %v518_v62, %v517_v61 }
  0xc1   : > { %776 = vst [vmem:[%s175_s10] sm:$0xff] %v775_v63  }
  0xc2 PF: > { %s13_s12 = sadd.s32 1, %s792_s12  }
  0xc3   : > { %p10_p4 = scmp.ge.s32.totalorder %s13_s12, 4  }
  0xc5   :  { %12 = sbr.rel (!%p10_p4) target bundleno = 1 (0x1), region = 62 }

// kernel: deepq_forward.5
= control target key start
LH: loop header
LB: loop body
LE: loop exit
PB: predicated region body
PF: predicated region fallthrough
CT: control target
= control target key end

     0   :  { %vm93_vm0 = vcmask 1041409   ;;  %vm96_vm1 = vcmask 1042434   ;;  %vm99_vm2 = vcmask 1043459   ;;  %vm102_vm3 = vcmask 1044484   ;;  %s2965_s1 = inlined_call_operand.vmem [shape: bf16[576,128], index: 1, kind: input, shape index: {}]   ;;  %s2966_s0 = inlined_call_operand.vmem [shape: bf16[8,3,3,64], index: 0, kind: input, shape index: {}]   ;;  %s2967_s2 = inlined_call_operand.vmem [shape: f32[1,128], index: 2, kind: input, shape index: {}]   ;;  %s2968_s3 = inlined_call_operand.vmem [shape: bf16[128,512], index: 3, kind: input, shape index: {}]   ;;  %s2969_s5 = inlined_call_operand.vmem [shape: bf16[512,128], index: 5, kind: input, shape index: {}]   ;;  %s2970_s6 = inlined_call_operand.vmem [shape: f32[1,128], index: 6, kind: input, shape index: {}]   ;;  %s2971_s4 = inlined_call_operand.vmem [shape: f32[1,512], index: 4, kind: input, shape index: {}]   ;;  %s2972_s7 = inlined_call_operand.vmem [shape: f32[8,128], index: 7, kind: output, shape index: {}]  }
   0x1   :  { %v2090_v0 = vld [vmem:[%s2965_s1 + $0x58] sm:$0xff]  ;;  %v2089_v4 = vld [vmem:[%s2965_s1 + $0x50] sm:$0xff]  ;;  %v27_v8 = vld [vmem:[%s2966_s0] sm:$0x1]  ;;  %vm105_vm4 = vcmask 1045509   ;;  %vm108_vm5 = vcmask 1046534  }
   0x2   :  { %v2086_v1 = vld [vmem:[%s2965_s1 + $0x38] sm:$0xff]  ;;  %346 = vmatpush.bf16.msra.mxu2 %v2090_v0  ;;  %v2085_v5 = vld [vmem:[%s2965_s1 + $0x30] sm:$0xff]  ;;  %v28_v9 = vld [vmem:[%s2966_s0 + $0x6] sm:$0x1]  ;;  %52 = vst [vmem:[#allocation1] ss:$4 sm:$0xff] %v27_v8 }
   0x3   :  { %v2094_v2 = vld [vmem:[%s2965_s1 + $0x78] sm:$0xff]  ;;  %146 = vmatpush.bf16.msra.mxu0 %v2086_v1  ;;  %v2093_v6 = vld [vmem:[%s2965_s1 + $0x70] sm:$0xff]  ;;  %v2088_v10 = vld [vmem:[%s2965_s1 + $0x48] sm:$0xff]  ;;  %57 = vst [vmem:[#allocation1 + $0x20] ss:$4 sm:$0xff] %v28_v9  ;;  %vm111_vm6 = vcmask 1047559  }
   0x4   :  { %v2082_v3 = vld [vmem:[%s2965_s1 + $0x18] sm:$0xff]  ;;  %460 = vmatpush.bf16.msra.mxu3 %v2094_v2  ;;  %v2081_v7 = vld [vmem:[%s2965_s1 + $0x10] sm:$0xff]  ;;  %v2084_v11 = vld [vmem:[%s2965_s1 + $0x28] sm:$0xff]  ;;  %vm138_vm7 = vcmask 523264  }
   0x5   :  { %234 = vmatpush.bf16.msra.mxu1 %v2082_v3  ;;  %v2092_v12 = vld [vmem:[%s2965_s1 + $0x68] sm:$0xff]  ;;  %v2087_v14 = vld [vmem:[%s2965_s1 + $0x40] sm:$0xff]  ;;  %v30_v18 = vld [vmem:[%s2966_s0 + $0x12] sm:$0x1] }
   0x6   :  { %347 = vmatpush.bf16.msra.mxu2 %v2089_v4  ;;  %v2080_v13 = vld [vmem:[%s2965_s1 + $0x8] sm:$0xff]  ;;  %v2083_v15 = vld [vmem:[%s2965_s1 + $0x20] sm:$0xff]  ;;  %v31_v21 = vld [vmem:[%s2966_s0 + $0x18] sm:$0x1] }
   0x7   :  { %147 = vmatpush.bf16.msra.mxu0 %v2085_v5  ;;  %v2091_v16 = vld [vmem:[%s2965_s1 + $0x60] sm:$0xff]  ;;  %v29_v17 = vld [vmem:[%s2966_s0 + $0xc] sm:$0x1]  ;;  %v32_v22 = vld [vmem:[%s2966_s0 + $0x1e] sm:$0x1] }
   0x8   :  { %461 = vmatpush.bf16.msra.mxu3 %v2093_v6  ;;  %v33_v25 = vld [vmem:[%s2966_s0 + $0x24] sm:$0x1]  ;;  %v34_v26 = vld [vmem:[%s2966_s0 + $0x2a] sm:$0x1]  ;;  %v243_v37 = vld [vmem:[%s2966_s0] sm:$0x2] }
   0x9   :  { %235 = vmatpush.bf16.msra.mxu1 %v2081_v7  ;;  %v53_v19 = vld.sshfl [vmem:[#allocation1] sm:$0xff pattern:$0x73625140]  ;;  %v245_v41 = vld [vmem:[%s2966_s0 + $0xc] sm:$0x2]  ;;  %v2106_v49 = vld [vmem:[%s2965_s1 + $0xd8] sm:$0xff] }
   0xa   :  { %348 = vmatpush.bf16.msra.mxu2 %v2088_v10  ;;  %v2278_v20 = vld.sshfl [vmem:[#allocation1 + $0x20] sm:$0xff pattern:$0x73625140]  ;;  %61 = vst [vmem:[#allocation1] ss:$4 sm:$0xff] %v29_v17  ;;  %v84_v46 = vunpack.c.l.b16 %v53_v19 }
   0xb   :  { %148 = vmatpush.bf16.msra.mxu0 %v2084_v11  ;;  %65 = vst [vmem:[#allocation1 + $0x20] ss:$4 sm:$0xff] %v30_v18  ;;  %v244_v38 = vld [vmem:[%s2966_s0 + $0x6] sm:$0x2]  ;;  %v246_v42 = vld [vmem:[%s2966_s0 + $0x12] sm:$0x2]  ;;  %v85_v47 = vunpack.c.l.b16 %v2278_v20 }
   0xc   :  { %462 = vmatpush.bf16.msra.mxu3 %v2092_v12  ;;  %v2079_v45 = vld [vmem:[%s2965_s1] sm:$0xff]  ;;  %v92_v55 = vrot.slane %v84_v46, 1  ;;  %v247_v61 = vld [vmem:[%s2966_s0 + $0x18] sm:$0x2]  ;;  %v248_v2 = vld [vmem:[%s2966_s0 + $0x1e] sm:$0x2] }
   0xd   :  { %236 = vmatpush.bf16.msra.mxu1 %v2080_v13 }
   0xe   :  { %349 = vmatpush.bf16.msra.mxu2 %v2087_v14  ;;  %v94_v59 = vsel %vm93_vm0, %v85_v47, %v92_v55  ;;  %v1678_v55 = vld [vmem:[%s2966_s0 + $0x20] sm:$0x1] }
   0xf   :  { %149 = vmatpush.bf16.msra.mxu0 %v2083_v15 }
  0x10   :  { %463 = vmatpush.bf16.msra.mxu3 %v2091_v16  ;;  %v249_v16 = vld [vmem:[%s2966_s0 + $0x24] sm:$0x2] }
  0x11   :  { %v62_v23 = vld.sshfl [vmem:[#allocation1] sm:$0xff pattern:$0x73625140]  ;;  %237 = vmatpush.bf16.msra.mxu1 %v2079_v45 }
  0x12   :  { %v66_v24 = vld.sshfl [vmem:[#allocation1 + $0x20] sm:$0xff pattern:$0x73625140]  ;;  %69 = vst [vmem:[#allocation1] ss:$4 sm:$0xff] %v31_v21  ;;  %v86_v48 = vunpack.c.l.b16 %v62_v23  ;;  %800 = vmatpush.bf16.msrb.mxu2 %v2106_v49 }
  0x13   :  { %73 = vst [vmem:[#allocation1 + $0x20] ss:$4 sm:$0xff] %v32_v22  ;;  %v87_v50 = vunpack.c.l.b16 %v66_v24 }
  0x14   :  { %v95_v56 = vrot.slane %v86_v48, 7  ;;  %v1675_v48 = vld [vmem:[%s2966_s0 + $0xe] sm:$0x1] }
  0x15   :  { %v98_v57 = vrot.slane %v87_v50, 6  ;;  %v1676_v50 = vld [vmem:[%s2966_s0 + $0x14] sm:$0x1] }
  0x16   :  { %v97_v0 = vsel %vm96_vm1, %v95_v56, %v94_v59 }
  0x17   :  { %v100_v3 = vsel %vm99_vm2, %v98_v57, %v97_v0 }
  0x19   :  { %v70_v27 = vld.sshfl [vmem:[#allocation1] sm:$0xff pattern:$0x73625140] }
  0x1a   :  { %v74_v28 = vld.sshfl [vmem:[#allocation1 + $0x20] sm:$0xff pattern:$0x73625140]  ;;  %77 = vst [vmem:[#allocation1] ss:$4 sm:$0xff] %v33_v25  ;;  %v88_v51 = vunpack.c.l.b16 %v70_v27 }
  0x1b   :  { %81 = vst [vmem:[#allocation1 + $0x20] ss:$4 sm:$0xff] %v34_v26  ;;  %v89_v52 = vunpack.c.l.b16 %v74_v28  ;;  %v1673_v28 = vld [vmem:[%s2966_s0 + $0x2] sm:$0x1] }
  0x1c   :  { %v101_v58 = vrot.slane %v88_v51, 5 }
  0x1d   :  { %v104_v60 = vrot.slane %v89_v52, 4 }
  0x1e   :  { %v103_v6 = vsel %vm102_vm3, %v101_v58, %v100_v3 }
  0x21   :  { %v78_v29 = vld.sshfl [vmem:[#allocation1] sm:$0xff pattern:$0x73625140] }
  0x22   :  { %v82_v30 = vld.sshfl [vmem:[#allocation1 + $0x20] sm:$0xff pattern:$0x73625140]  ;;  %155 = vst [vmem:[#allocation1] ss:$4 sm:$0xff] %v27_v8  ;;  %v90_v53 = vunpack.c.l.b16 %v78_v29  ;;  %v106_v8 = vsel %vm105_vm4, %v104_v60, %v103_v6 }
  0x23   :  { %159 = vst [vmem:[#allocation1 + $0x20] ss:$4 sm:$0xff] %v28_v9  ;;  %v91_v54 = vunpack.c.l.b16 %v82_v30  ;;  %v1674_v30 = vld [vmem:[%s2966_s0 + $0x8] sm:$0x1] }
  0x24   :  { %v107_v1 = vrot.slane %v90_v53, 3  ;;  %v1677_v53 = vld [vmem:[%s2966_s0 + $0x1a] sm:$0x1] }
  0x25   :  { %v110_v4 = vrot.slane %v91_v54, 2 }
  0x26   :  { %v109_v11 = vsel %vm108_vm5, %v107_v1, %v106_v8  ;;  %v1680_v1 = vld [vmem:[%s2966_s0 + $0x2c] sm:$0x1] }
  0x27   :  { %v112_v12 = vsel %vm111_vm6, %v110_v4, %v109_v11  ;;  %v1698_v11 = vld [vmem:[%s2966_s0 + $0x2] sm:$0x1] }
  0x28   :  { %v113_v14 = vpack.c.b16 %v112_v12, %v112_v12 }
  0x29   :  { %v2292_v31 = vld.sshfl [vmem:[#allocation1] sm:$0xff pattern:$0x73625140] }
  0x2a   :  { %v2294_v32 = vld.sshfl [vmem:[#allocation1 + $0x20] sm:$0xff pattern:$0x73625140]  ;;  %162 = vst [vmem:[#allocation1] ss:$4 sm:$0xff] %v29_v17  ;;  %1638 = vmatmul.msk.bf16.vlgmr.msra.gmra.mxu0 %vm138_vm7, %v113_v14 }
  0x2b   :  { %165 = vst [vmem:[#allocation1 + $0x20] ss:$4 sm:$0xff] %v30_v18  ;;  %v250_v18 = vld [vmem:[%s2966_s0 + $0x2a] sm:$0x2] }
  0x31   :  { %v2296_v33 = vld.sshfl [vmem:[#allocation1] sm:$0xff pattern:$0x73625140] }
  0x32   :  { %v2298_v34 = vld.sshfl [vmem:[#allocation1 + $0x20] sm:$0xff pattern:$0x73625140]  ;;  %168 = vst [vmem:[#allocation1] ss:$4 sm:$0xff] %v31_v21 }
  0x33   :  { %171 = vst [vmem:[#allocation1 + $0x20] ss:$4 sm:$0xff] %v32_v22 }
  0x39   :  { %v2300_v35 = vld.sshfl [vmem:[#allocation1] sm:$0xff pattern:$0x73625140] }
  0x3a   :  { %v2302_v36 = vld.sshfl [vmem:[#allocation1 + $0x20] sm:$0xff pattern:$0x73625140]  ;;  %174 = vst [vmem:[#allocation1] ss:$4 sm:$0xff] %v33_v25 }
  0x3b   :  { %177 = vst [vmem:[#allocation1 + $0x20] ss:$4 sm:$0xff] %v34_v26 }
  0x41   :  { %v2310_v39 = vld.sshfl [vmem:[#allocation1] sm:$0xff pattern:$0x73625140] }
  0x42   :  { %v2312_v40 = vld.sshfl [vmem:[#allocation1 + $0x20] sm:$0xff pattern:$0x73625140]  ;;  %260 = vst [vmem:[#allocation1] ss:$4 sm:$0xff] %v243_v37 }
  0x43   :  { %265 = vst [vmem:[#allocation1 + $0x20] ss:$4 sm:$0xff] %v244_v38 }
  0x49   :  { %v261_v43 = vld.sshfl [vmem:[#allocation1] sm:$0xff pattern:$0x73625140] }
  0x4a   :  { %v266_v44 = vld.sshfl [vmem:[#allocation1 + $0x20] sm:$0xff pattern:$0x73625140]  ;;  %269 = vst [vmem:[#allocation1] ss:$4 sm:$0xff] %v245_v41  ;;  %v292_v62 = vunpack.c.l.b16 %v261_v43 }
  0x4b   :  { %273 = vst [vmem:[#allocation1 + $0x20] ss:$4 sm:$0xff] %v246_v42  ;;  %v293_v63 = vunpack.c.l.b16 %v266_v44 }
  0x4c   :  { %v300_v9 = vrot.slane %v292_v62, 2 }
  0x4d   :  { %v301_v10 = vrot.slane %v293_v63, 1  ;;  %v1679_v63 = vld [vmem:[%s2966_s0 + $0x26] sm:$0x1] }
  0x4f   :  { %v302_v17 = vsel %vm93_vm0, %v301_v10, %v300_v9 }
  0x51   :  { %v270_v5 = vld.sshfl [vmem:[#allocation1] sm:$0xff pattern:$0x73625140] }
  0x52   :  { %v274_v7 = vld.sshfl [vmem:[#allocation1 + $0x20] sm:$0xff pattern:$0x73625140]  ;;  %277 = vst [vmem:[#allocation1] ss:$4 sm:$0xff] %v247_v61  ;;  %v294_v15 = vunpack.c.l.b16 %v270_v5 }
  0x53   :  { %281 = vst [vmem:[#allocation1 + $0x20] ss:$4 sm:$0xff] %v248_v2  ;;  %v295_v13 = vunpack.c.l.b16 %v274_v7 }
  0x54   :  { %v303_v23 = vsel %vm96_vm1, %v294_v15, %v302_v17 }
  0x55   :  { %v304_v20 = vrot.slane %v295_v13, 7  ;;  %v1699_v13 = vld [vmem:[%s2966_s0 + $0x8] sm:$0x1] }
  0x57   :  { %v305_v26 = vsel %vm99_vm2, %v304_v20, %v303_v23  ;;  %v1700_v23 = vld [vmem:[%s2966_s0 + $0xe] sm:$0x1] }
  0x59   :  { %v278_v19 = vld.sshfl [vmem:[#allocation1] sm:$0xff pattern:$0x73625140] }
  0x5a   :  { %v282_v21 = vld.sshfl [vmem:[#allocation1 + $0x20] sm:$0xff pattern:$0x73625140]  ;;  %285 = vst [vmem:[#allocation1] ss:$4 sm:$0xff] %v249_v16  ;;  %v296_v22 = vunpack.c.l.b16 %v278_v19 }
  0x5b   :  { %289 = vst [vmem:[#allocation1 + $0x20] ss:$4 sm:$0xff] %v250_v18  ;;  %v297_v24 = vunpack.c.l.b16 %v282_v21 }
  0x5c   :  { %v306_v25 = vrot.slane %v296_v22, 6 }
  0x5d   :  { %v308_v27 = vrot.slane %v297_v24, 5 }
  0x5e   :  { %v307_v29 = vsel %vm102_vm3, %v306_v25, %v305_v26  ;;  %v1701_v25 = vld [vmem:[%s2966_s0 + $0x14] sm:$0x1] }
  0x5f   :  { %v309_v43 = vsel %vm105_vm4, %v308_v27, %v307_v29  ;;  %v2110_v29 = vld [vmem:[%s2965_s1 + $0xf8] sm:$0xff] }
  0x60   :  { %913 = vmatpush.bf16.msrb.mxu3 %v2110_v29 }
  0x61   :  { %v286_v37 = vld.sshfl [vmem:[#allocation1] sm:$0xff pattern:$0x73625140] }
  0x62   :  { %v290_v38 = vld.sshfl [vmem:[#allocation1 + $0x20] sm:$0xff pattern:$0x73625140]  ;;  %v298_v41 = vunpack.c.l.b16 %v286_v37  ;;  %374 = vst [vmem:[#allocation1] ss:$4 sm:$0xff] %v1673_v28  ;;  %v2098_v28 = vld [vmem:[%s2965_s1 + $0x98] sm:$0xff]  ;;  %v181_v37 = vunpack.c.l.b16 %v2294_v32  ;;  %v187_v32 = vunpack.c.l.b16 %v2312_v40 }
  0x63   :  { %v299_v42 = vunpack.c.l.b16 %v290_v38  ;;  %379 = vst [vmem:[#allocation1 + $0x20] ss:$4 sm:$0xff] %v1674_v30  ;;  %v180_v30 = vunpack.c.l.b16 %v2292_v31  ;;  %v182_v38 = vunpack.c.l.b16 %v2296_v33  ;;  %v2105_v31 = vld [vmem:[%s2965_s1 + $0xd0] sm:$0xff]  ;;  %573 = vmatpush.bf16.msrb.mxu0 %v2098_v28  ;;  %v2104_v40 = vld [vmem:[%s2965_s1 + $0xc8] sm:$0xff] }
  0x64   :  { %v310_v44 = vrot.slane %v298_v41, 4  ;;  %v183_v41 = vunpack.c.l.b16 %v2298_v34  ;;  %v188_v33 = vrot.slane %v181_v37, 7  ;;  %801 = vmatpush.bf16.msrb.mxu2 %v2105_v31  ;;  %v1749_v28 = vld [vmem:[%s2966_s0 + $0xa] sm:$0x1]  ;;  %v1750_v37 = vld [vmem:[%s2966_s0 + $0x10] sm:$0x1] }
  0x65   :  { %v312_v45 = vrot.slane %v299_v42, 3  ;;  %v2102_v42 = vld [vmem:[%s2965_s1 + $0xb8] sm:$0xff]  ;;  %v190_v34 = vrot.slane %v182_v38, 6  ;;  %v1751_v38 = vld [vmem:[%s2966_s0 + $0x16] sm:$0x1] }
  0x66   :  { %v311_v46 = vsel %vm108_vm5, %v310_v44, %v309_v43  ;;  %v184_v43 = vunpack.c.l.b16 %v2300_v35  ;;  %v185_v44 = vunpack.c.l.b16 %v2302_v36  ;;  %v2109_v35 = vld [vmem:[%s2965_s1 + $0xf0] sm:$0xff]  ;;  %686 = vmatpush.bf16.msrb.mxu1 %v2102_v42 }
  0x67   :  { %v313_v47 = vsel %vm111_vm6, %v312_v45, %v311_v46  ;;  %v186_v45 = vunpack.c.l.b16 %v2310_v39  ;;  %v192_v46 = vrot.slane %v183_v41, 5  ;;  %v2101_v39 = vld [vmem:[%s2965_s1 + $0xb0] sm:$0xff]  ;;  %914 = vmatpush.bf16.msrb.mxu3 %v2109_v35 }
  0x68   :  { %v314_v49 = vpack.c.b16 %v313_v47, %v313_v47  ;;  %v2097_v47 = vld [vmem:[%s2965_s1 + $0x90] sm:$0xff]  ;;  %v194_v36 = vrot.slane %v184_v43, 4  ;;  %802 = vmatpush.bf16.msrb.mxu2 %v2104_v40  ;;  %v2099_v43 = vld [vmem:[%s2965_s1 + $0xa0] sm:$0xff] }
  0x69   :  { %v375_v51 = vld.sshfl [vmem:[#allocation1] sm:$0xff pattern:$0x73625140]  ;;  %574 = vmatpush.bf16.msrb.mxu0 %v2097_v47 }
  0x6a   :  { %1672 = vmatmul.msk.bf16.vlgmr.msra.gmra.mxu2 %vm138_vm7, %v314_v49  ;;  %v380_v52 = vld.sshfl [vmem:[#allocation1 + $0x20] sm:$0xff pattern:$0x73625140]  ;;  %383 = vst [vmem:[#allocation1] ss:$4 sm:$0xff] %v1675_v48  ;;  %v406_v59 = vunpack.c.l.b16 %v375_v51  ;;  %v189_v49 = vsel %vm93_vm0, %v188_v33, %v180_v30  ;;  %687 = vmatpush.bf16.msrb.mxu1 %v2101_v39 }
  0x6b   :  { %387 = vst [vmem:[#allocation1 + $0x20] ss:$4 sm:$0xff] %v1676_v50  ;;  %v407_v54 = vunpack.c.l.b16 %v380_v52  ;;  %v1702_v48 = vld [vmem:[%s2966_s0 + $0x1a] sm:$0x1]  ;;  %v196_v50 = vrot.slane %v185_v44, 3  ;;  %v191_v52 = vsel %vm96_vm1, %v190_v34, %v189_v49 }
  0x6c   :  { %v1703_v51 = vld [vmem:[%s2966_s0 + $0x20] sm:$0x1] }
  0x6d   :  { %v414_v60 = vrot.slane %v407_v54, 7  ;;  %v2096_v54 = vld [vmem:[%s2965_s1 + $0x88] sm:$0xff] }
  0x6e   :  { %575 = vmatpush.bf16.msrb.mxu0 %v2096_v54 }
  0x6f   :  { %v415_v0 = vsel %vm93_vm0, %v414_v60, %v406_v59  ;;  %v2100_v59 = vld [vmem:[%s2965_s1 + $0xa8] sm:$0xff] }
  0x70   :  { %688 = vmatpush.bf16.msrb.mxu1 %v2100_v59 }
  0x71   :  { %v384_v56 = vld.sshfl [vmem:[#allocation1] sm:$0xff pattern:$0x73625140] }
  0x72   :  { %v388_v57 = vld.sshfl [vmem:[#allocation1 + $0x20] sm:$0xff pattern:$0x73625140]  ;;  %391 = vst [vmem:[#allocation1] ss:$4 sm:$0xff] %v1677_v53  ;;  %v408_v58 = vunpack.c.l.b16 %v384_v56  ;;  %v198_v53 = vrot.slane %v186_v45, 2  ;;  %v193_v56 = vsel %vm99_vm2, %v192_v46, %v191_v52 }
  0x73   :  { %395 = vst [vmem:[#allocation1 + $0x20] ss:$4 sm:$0xff] %v1678_v55  ;;  %v409_v61 = vunpack.c.l.b16 %v388_v57  ;;  %v200_v57 = vrot.slane %v187_v32, 1  ;;  %v1753_v52 = vld [vmem:[%s2966_s0 + $0x22] sm:$0x1] }
  0x74   :  { %v416_v62 = vrot.slane %v408_v58, 6  ;;  %v2108_v58 = vld [vmem:[%s2965_s1 + $0xe8] sm:$0xff]  ;;  %689 = vmatpush.bf16.msrb.mxu1 %v2099_v43 }
  0x75   :  { %v418_v3 = vrot.slane %v409_v61, 5  ;;  %v195_v61 = vsel %vm102_vm3, %v194_v36, %v193_v56  ;;  %915 = vmatpush.bf16.msrb.mxu3 %v2108_v58 }
  0x76   :  { %v417_v6 = vsel %vm96_vm1, %v416_v62, %v415_v0  ;;  %v2103_v62 = vld [vmem:[%s2965_s1 + $0xc0] sm:$0xff] }
  0x77   :  { %v419_v9 = vsel %vm99_vm2, %v418_v3, %v417_v6  ;;  %v2107_v3 = vld [vmem:[%s2965_s1 + $0xe0] sm:$0xff]  ;;  %803 = vmatpush.bf16.msrb.mxu2 %v2103_v62  ;;  %v1705_v6 = vld [vmem:[%s2966_s0 + $0x2c] sm:$0x1] }
  0x79   :  { %v392_v2 = vld.sshfl [vmem:[#allocation1] sm:$0xff pattern:$0x73625140]  ;;  %916 = vmatpush.bf16.msrb.mxu3 %v2107_v3  ;;  %v1754_v3 = vld [vmem:[%s2966_s0 + $0x28] sm:$0x1] }
  0x7a   :  { %v396_v4 = vld.sshfl [vmem:[#allocation1 + $0x20] sm:$0xff pattern:$0x73625140]  ;;  %399 = vst [vmem:[#allocation1] ss:$4 sm:$0xff] %v1679_v63  ;;  %v410_v5 = vunpack.c.l.b16 %v392_v2  ;;  %v197_v63 = vsel %vm105_vm4, %v196_v50, %v195_v61 }
  0x7b   :  { %403 = vst [vmem:[#allocation1 + $0x20] ss:$4 sm:$0xff] %v1680_v1  ;;  %v411_v7 = vunpack.c.l.b16 %v396_v4  ;;  %v199_v0 = vsel %vm108_vm5, %v198_v53, %v197_v63  ;;  %v2095_v2 = vld [vmem:[%s2965_s1 + $0x80] sm:$0xff] }
  0x7c   :  { %v420_v8 = vrot.slane %v410_v5, 4  ;;  %v201_v1 = vsel %vm111_vm6, %v200_v57, %v199_v0  ;;  %v1704_v5 = vld [vmem:[%s2966_s0 + $0x26] sm:$0x1]  ;;  %576 = vmatpush.bf16.msrb.mxu0 %v2095_v2 }
  0x7d   :  { %v422_v10 = vrot.slane %v411_v7, 3  ;;  %v202_v4 = vpack.c.b16 %v201_v1, %v201_v1 }
  0x7e   :  { %v421_v12 = vsel %vm102_vm3, %v420_v8, %v419_v9  ;;  %v1723_v9 = vld [vmem:[%s2966_s0 + $0x2] sm:$0x2] }
  0x7f   :  { %v423_v18 = vsel %vm105_vm4, %v422_v10, %v421_v12  ;;  %1655 = vmatmul.msk.bf16.vlgmr.msra.gmra.mxu1 %vm138_vm7, %v202_v4  ;;  %v1724_v10 = vld [vmem:[%s2966_s0 + $0x8] sm:$0x2] }
  0x81   :  { %v400_v14 = vld.sshfl [vmem:[#allocation1] sm:$0xff pattern:$0x73625140] }
  0x82   :  { %v404_v15 = vld.sshfl [vmem:[#allocation1 + $0x20] sm:$0xff pattern:$0x73625140]  ;;  %v412_v16 = vunpack.c.l.b16 %v400_v14  ;;  %487 = vst [vmem:[#allocation1] ss:$4 sm:$0xff] %v1698_v11 }
  0x83   :  { %v413_v17 = vunpack.c.l.b16 %v404_v15  ;;  %492 = vst [vmem:[#allocation1 + $0x20] ss:$4 sm:$0xff] %v1699_v13  ;;  %v1725_v13 = vld [vmem:[%s2966_s0 + $0xe] sm:$0x2]  ;;  %v1726_v14 = vld [vmem:[%s2966_s0 + $0x14] sm:$0x2] }
  0x84   :  { %v424_v19 = vrot.slane %v412_v16, 2 }
  0x85   :  { %v426_v20 = vrot.slane %v413_v17, 1  ;;  %v1727_v17 = vld [vmem:[%s2966_s0 + $0x1a] sm:$0x2] }
  0x86   :  { %v425_v21 = vsel %vm108_vm5, %v424_v19, %v423_v18  ;;  %v1728_v18 = vld [vmem:[%s2966_s0 + $0x20] sm:$0x2] }
  0x87   :  { %v427_v22 = vsel %vm111_vm6, %v426_v20, %v425_v21  ;;  %v1729_v21 = vld [vmem:[%s2966_s0 + $0x26] sm:$0x2] }
  0x88   :  { %v428_v24 = vpack.c.b16 %v427_v22, %v427_v22  ;;  %v1730_v22 = vld [vmem:[%s2966_s0 + $0x2c] sm:$0x2] }
  0x89   :  { %v2398_v26 = vld.sshfl [vmem:[#allocation1] sm:$0xff pattern:$0x73625140] }
  0x8a   :  { %1697 = vmatmul.msk.bf16.vlgmr.msra.gmra.mxu3 %vm138_vm7, %v428_v24  ;;  %v2401_v27 = vld.sshfl [vmem:[#allocation1 + $0x20] sm:$0xff pattern:$0x73625140]  ;;  %496 = vst [vmem:[#allocation1] ss:$4 sm:$0xff] %v1700_v23  ;;  %v519_v44 = vunpack.c.l.b16 %v2398_v26 }
  0x8b   :  { %500 = vst [vmem:[#allocation1 + $0x20] ss:$4 sm:$0xff] %v1701_v25  ;;  %v1748_v25 = vld [vmem:[%s2966_s0 + $0x4] sm:$0x1]  ;;  %v520_v45 = vunpack.c.l.b16 %v2401_v27  ;;  %v1752_v26 = vld [vmem:[%s2966_s0 + $0x1c] sm:$0x1] }
  0x8c   :  { %v527_v35 = vrot.slane %v519_v44, 1 }
  0x91   :  { %v2446_v55 = vld.sshfl [vmem:[#allocation1] sm:$0xff pattern:$0x73625140] }
  0x92   :  { %v2455_v60 = vld.sshfl [vmem:[#allocation1 + $0x20] sm:$0xff pattern:$0x73625140]  ;;  %504 = vst [vmem:[#allocation1] ss:$4 sm:$0xff] %v1702_v48  ;;  %v521_v31 = vunpack.c.l.b16 %v2446_v55  ;;  %v528_v48 = vsel %vm93_vm0, %v520_v45, %v527_v35 }
  0x93   :  { %508 = vst [vmem:[#allocation1 + $0x20] ss:$4 sm:$0xff] %v1703_v51  ;;  %v522_v32 = vunpack.c.l.b16 %v2455_v60  ;;  %v1776_v35 = vld [vmem:[%s2966_s0 + $0x16] sm:$0x1] }
  0x94   :  { %v529_v36 = vrot.slane %v521_v31, 7 }
  0x95   :  { %v531_v39 = vrot.slane %v522_v32, 6  ;;  %v1775_v32 = vld [vmem:[%s2966_s0 + $0x10] sm:$0x1] }
  0x96   :  { %v530_v50 = vsel %vm96_vm1, %v529_v36, %v528_v48 }
  0x97   :  { %v532_v53 = vsel %vm99_vm2, %v531_v39, %v530_v50 }
  0x99   :  { %v505_v7 = vld.sshfl [vmem:[#allocation1] sm:$0xff pattern:$0x73625140] }
  0x9a   :  { %v509_v8 = vld.sshfl [vmem:[#allocation1 + $0x20] sm:$0xff pattern:$0x73625140]  ;;  %512 = vst [vmem:[#allocation1] ss:$4 sm:$0xff] %v1704_v5  ;;  %v523_v33 = vunpack.c.l.b16 %v505_v7 }
  0x9b   :  { %516 = vst [vmem:[#allocation1 + $0x20] ss:$4 sm:$0xff] %v1705_v6  ;;  %v524_v34 = vunpack.c.l.b16 %v509_v8  ;;  %v1755_v5 = vld [vmem:[%s2966_s0 + $0x2e] sm:$0x1] }
  0x9c   :  { %v533_v40 = vrot.slane %v523_v33, 5 }
  0x9d   :  { %v535_v49 = vrot.slane %v524_v34, 4 }
  0x9e   :  { %v534_v56 = vsel %vm102_vm3, %v533_v40, %v532_v53 }
  0x9f   :  { %v536_v59 = vsel %vm105_vm4, %v535_v49, %v534_v56 }
  0xa1   :  { %v513_v11 = vld.sshfl [vmem:[#allocation1] sm:$0xff pattern:$0x73625140] }
  0xa2   :  { %v517_v12 = vld.sshfl [vmem:[#allocation1 + $0x20] sm:$0xff pattern:$0x73625140]  ;;  %600 = vst [vmem:[#allocation1] ss:$4 sm:$0xff] %v1723_v9  ;;  %v525_v46 = vunpack.c.l.b16 %v513_v11 }
  0xa3   :  { %605 = vst [vmem:[#allocation1 + $0x20] ss:$4 sm:$0xff] %v1724_v10  ;;  %v526_v47 = vunpack.c.l.b16 %v517_v12 }
  0xa4   :  { %v537_v51 = vrot.slane %v525_v46, 3 }
  0xa5   :  { %v539_v54 = vrot.slane %v526_v47, 2 }
  0xa6   :  { %v538_v62 = vsel %vm108_vm5, %v537_v51, %v536_v59  ;;  %v2112_v59 = vld [vmem:[%s2965_s1 + $0x108] sm:$0xff] }
  0xa7   :  { %v540_v63 = vsel %vm111_vm6, %v539_v54, %v538_v62  ;;  %v1777_v54 = vld [vmem:[%s2966_s0 + $0x1c] sm:$0x1] }
  0xa8   :  { %v541_v1 = vpack.c.b16 %v540_v63, %v540_v63 }
  0xa9   :  { %v2489_v15 = vld.sshfl [vmem:[#allocation1] sm:$0xff pattern:$0x73625140] }
  0xaa   :  { %v2491_v16 = vld.sshfl [vmem:[#allocation1 + $0x20] sm:$0xff pattern:$0x73625140]  ;;  %609 = vst [vmem:[#allocation1] ss:$4 sm:$0xff] %v1725_v13  ;;  %1722 = vmatmul.msk.bf16.vlgmr.msrb.gmra.mxu0 %vm138_vm7, %v541_v1  ;;  %v632_v43 = vunpack.c.l.b16 %v2489_v15 }
  0xab   :  { %613 = vst [vmem:[#allocation1 + $0x20] ss:$4 sm:$0xff] %v1726_v14  ;;  %v633_v44 = vunpack.c.l.b16 %v2491_v16 }
  0xac   :  { %v640_v34 = vrot.slane %v632_v43, 2 }
  0xad   :  { %v641_v46 = vrot.slane %v633_v44, 1 }
  0xaf   :  { %v642_v40 = vsel %vm93_vm0, %v641_v46, %v640_v34  ;;  %v1801_v34 = vld [vmem:[%s2966_s0 + $0x16] sm:$0x2] }
  0xb1   :  { %v2499_v19 = vld.sshfl [vmem:[#allocation1] sm:$0xff pattern:$0x73625140] }
  0xb2   :  { %v2501_v20 = vld.sshfl [vmem:[#allocation1 + $0x20] sm:$0xff pattern:$0x73625140]  ;;  %617 = vst [vmem:[#allocation1] ss:$4 sm:$0xff] %v1727_v17  ;;  %v634_v15 = vunpack.c.l.b16 %v2499_v19  ;;  %v2114_v19 = vld [vmem:[%s2965_s1 + $0x118] sm:$0xff] }
  0xb3   :  { %621 = vst [vmem:[#allocation1 + $0x20] ss:$4 sm:$0xff] %v1728_v18  ;;  %v1773_v17 = vld [vmem:[%s2966_s0 + $0x4] sm:$0x1]  ;;  %v635_v33 = vunpack.c.l.b16 %v2501_v20  ;;  %1026 = vmatpush.bf16.msra.mxu0 %v2114_v19 }
  0xb5   :  { %v644_v48 = vrot.slane %v635_v33, 7 }
  0xb9   :  { %v2509_v23 = vld.sshfl [vmem:[#allocation1] sm:$0xff pattern:$0x73625140] }
  0xba   :  { %v2511_v24 = vld.sshfl [vmem:[#allocation1 + $0x20] sm:$0xff pattern:$0x73625140]  ;;  %625 = vst [vmem:[#allocation1] ss:$4 sm:$0xff] %v1729_v21  ;;  %v636_v16 = vunpack.c.l.b16 %v2509_v23 }
  0xbb   :  { %629 = vst [vmem:[#allocation1 + $0x20] ss:$4 sm:$0xff] %v1730_v22  ;;  %v1774_v21 = vld [vmem:[%s2966_s0 + $0xa] sm:$0x1]  ;;  %v637_v39 = vunpack.c.l.b16 %v2511_v24 }
  0xbc   :  { %v646_v24 = vrot.slane %v636_v16, 6 }
  0xbd   :  { %v648_v50 = vrot.slane %v637_v39, 5 }
  0xc1   :  { %v2519_v29 = vld.sshfl [vmem:[#allocation1] sm:$0xff pattern:$0x73625140] }
  0xc2   :  { %v2521_v30 = vld.sshfl [vmem:[#allocation1 + $0x20] sm:$0xff pattern:$0x73625140]  ;;  %714 = vst [vmem:[#allocation1] ss:$4 sm:$0xff] %v1748_v25  ;;  %v638_v49 = vunpack.c.l.b16 %v2519_v29  ;;  %v2113_v29 = vld [vmem:[%s2965_s1 + $0x110] sm:$0xff] }
  0xc3   :  { %719 = vst [vmem:[#allocation1 + $0x20] ss:$4 sm:$0xff] %v1749_v28  ;;  %1027 = vmatpush.bf16.msra.mxu0 %v2113_v29 }
  0xc4   :  { %v650_v51 = vrot.slane %v638_v49, 4 }
  0xc7   :  { %1028 = vmatpush.bf16.msra.mxu0 %v2112_v59 }
  0xc9   :  { %v715_v41 = vld.sshfl [vmem:[#allocation1] sm:$0xff pattern:$0x73625140] }
  0xca   :  { %v720_v42 = vld.sshfl [vmem:[#allocation1 + $0x20] sm:$0xff pattern:$0x73625140]  ;;  %723 = vst [vmem:[#allocation1] ss:$4 sm:$0xff] %v1750_v37  ;;  %v746_v60 = vunpack.c.l.b16 %v715_v41 }
  0xcb   :  { %727 = vst [vmem:[#allocation1 + $0x20] ss:$4 sm:$0xff] %v1751_v38  ;;  %v747_v27 = vunpack.c.l.b16 %v720_v42 }
  0xcd   :  { %v754_v61 = vrot.slane %v747_v27, 7  ;;  %v643_v27 = vsel %vm96_vm1, %v634_v15, %v642_v40 }
  0xce   :  { %v645_v23 = vsel %vm99_vm2, %v644_v48, %v643_v27  ;;  %v1803_v48 = vld [vmem:[%s2966_s0 + $0x22] sm:$0x2] }
  0xcf   :  { %v755_v4 = vsel %vm93_vm0, %v754_v61, %v746_v60 }
  0xd1   :  { %v724_v55 = vld.sshfl [vmem:[#allocation1] sm:$0xff pattern:$0x73625140] }
  0xd2   :  { %v728_v57 = vld.sshfl [vmem:[#allocation1 + $0x20] sm:$0xff pattern:$0x73625140]  ;;  %731 = vst [vmem:[#allocation1] ss:$4 sm:$0xff] %v1752_v26  ;;  %v748_v58 = vunpack.c.l.b16 %v724_v55  ;;  %v639_v26 = vunpack.c.l.b16 %v2521_v30  ;;  %v647_v30 = vsel %vm102_vm3, %v646_v24, %v645_v23 }
  0xd3   :  { %735 = vst [vmem:[#allocation1 + $0x20] ss:$4 sm:$0xff] %v1753_v52  ;;  %v749_v0 = vunpack.c.l.b16 %v728_v57  ;;  %v649_v53 = vsel %vm105_vm4, %v648_v50, %v647_v30  ;;  %v1778_v57 = vld [vmem:[%s2966_s0 + $0x22] sm:$0x1]  ;;  %v1804_v30 = vld [vmem:[%s2966_s0 + $0x28] sm:$0x2] }
  0xd4   :  { %v756_v2 = vrot.slane %v748_v58, 6  ;;  %v652_v52 = vrot.slane %v639_v26, 3  ;;  %v651_v56 = vsel %vm108_vm5, %v650_v51, %v649_v53 }
  0xd5   :  { %v758_v7 = vrot.slane %v749_v0, 5 }
  0xd6   :  { %v757_v10 = vsel %vm96_vm1, %v756_v2, %v755_v4  ;;  %v653_v58 = vsel %vm111_vm6, %v652_v52, %v651_v56  ;;  %v2111_v2 = vld [vmem:[%s2965_s1 + $0x100] sm:$0xff] }
  0xd7   :  { %v759_v13 = vsel %vm99_vm2, %v758_v7, %v757_v10  ;;  %v654_v61 = vpack.c.b16 %v653_v58, %v653_v58  ;;  %v1780_v7 = vld [vmem:[%s2966_s0 + $0x2e] sm:$0x1]  ;;  %1029 = vmatpush.bf16.msra.mxu0 %v2111_v2 }
  0xd9   :  { %v732_v6 = vld.sshfl [vmem:[#allocation1] sm:$0xff pattern:$0x73625140]  ;;  %1747 = vmatmul.msk.bf16.vlgmr.msrb.gmra.mxu1 %vm138_vm7, %v654_v61 }
  0xda   :  { %v736_v8 = vld.sshfl [vmem:[#allocation1 + $0x20] sm:$0xff pattern:$0x73625140]  ;;  %739 = vst [vmem:[#allocation1] ss:$4 sm:$0xff] %v1754_v3  ;;  %v750_v9 = vunpack.c.l.b16 %v732_v6 }
  0xdb   :  { %743 = vst [vmem:[#allocation1 + $0x20] ss:$4 sm:$0xff] %v1755_v5  ;;  %v751_v11 = vunpack.c.l.b16 %v736_v8  ;;  %v1779_v5 = vld [vmem:[%s2966_s0 + $0x28] sm:$0x1] }
  0xdc   :  { %v760_v12 = vrot.slane %v750_v9, 4 }
  0xdd   :  { %v762_v14 = vrot.slane %v751_v11, 3 }
  0xde   :  { %v761_v18 = vsel %vm102_vm3, %v760_v12, %v759_v13 }
  0xdf   :  { %v763_v38 = vsel %vm105_vm4, %v762_v14, %v761_v18 }
  0xe1   :  { %v740_v22 = vld.sshfl [vmem:[#allocation1] sm:$0xff pattern:$0x73625140] }
  0xe2   :  { %v744_v25 = vld.sshfl [vmem:[#allocation1 + $0x20] sm:$0xff pattern:$0x73625140]  ;;  %v752_v28 = vunpack.c.l.b16 %v740_v22  ;;  %827 = vst [vmem:[#allocation1] ss:$4 sm:$0xff] %v1773_v17 }
  0xe3   :  { %v753_v37 = vunpack.c.l.b16 %v744_v25  ;;  %832 = vst [vmem:[#allocation1 + $0x20] ss:$4 sm:$0xff] %v1774_v21  ;;  %v1798_v21 = vld [vmem:[%s2966_s0 + $0x4] sm:$0x2]  ;;  %v1799_v25 = vld [vmem:[%s2966_s0 + $0xa] sm:$0x2] }
  0xe4   :  { %v764_v41 = vrot.slane %v752_v28, 2 }
  0xe5   :  { %v766_v42 = vrot.slane %v753_v37, 1 }
  0xe6   :  { %v765_v45 = vsel %vm108_vm5, %v764_v41, %v763_v38 }
  0xe7   :  { %v767_v31 = vsel %vm111_vm6, %v766_v42, %v765_v45 }
  0xe8   :  { %v768_v47 = vpack.c.b16 %v767_v31, %v767_v31 }
  0xe9   :  { %v828_v36 = vld.sshfl [vmem:[#allocation1] sm:$0xff pattern:$0x73625140] }
  0xea   :  { %1772 = vmatmul.msk.bf16.vlgmr.msrb.gmra.mxu2 %vm138_vm7, %v768_v47  ;;  %v833_v20 = vld.sshfl [vmem:[#allocation1 + $0x20] sm:$0xff pattern:$0x73625140]  ;;  %836 = vst [vmem:[#allocation1] ss:$4 sm:$0xff] %v1775_v32  ;;  %v859_v55 = vunpack.c.l.b16 %v828_v36 }
  0xeb   :  { %840 = vst [vmem:[#allocation1 + $0x20] ss:$4 sm:$0xff] %v1776_v35  ;;  %v860_v0 = vunpack.c.l.b16 %v833_v20  ;;  %v1800_v32 = vld [vmem:[%s2966_s0 + $0x10] sm:$0x2]  ;;  %v151_v35 = vpop.f32.mrf.mxu0  ;;  %v1802_v36 = vld [vmem:[%s2966_s0 + $0x1c] sm:$0x2] }
  0xec   :  { %v867_v1 = vrot.slane %v859_v55, 1 }
  0xed   :  { %v351_v15 = vpop.f32.mrf.mxu2 }
  0xee   :  { %v868_v6 = vsel %vm93_vm0, %v860_v0, %v867_v1 }
  0xf1   :  { %v837_v60 = vld.sshfl [vmem:[#allocation1] sm:$0xff pattern:$0x73625140] }
  0xf2   :  { %v841_v62 = vld.sshfl [vmem:[#allocation1 + $0x20] sm:$0xff pattern:$0x73625140]  ;;  %844 = vst [vmem:[#allocation1] ss:$4 sm:$0xff] %v1777_v54  ;;  %v861_v63 = vunpack.c.l.b16 %v837_v60 }
  0xf3   :  { %848 = vst [vmem:[#allocation1 + $0x20] ss:$4 sm:$0xff] %v1778_v57  ;;  %v862_v3 = vunpack.c.l.b16 %v841_v62  ;;  %v153_v26 = vpop.f32.mrf.mxu0  ;;  %v1805_v54 = vld [vmem:[%s2966_s0 + $0x2e] sm:$0x2] }
  0xf4   :  { %v869_v4 = vrot.slane %v861_v63, 7 }
  0xf5   :  { %v871_v9 = vrot.slane %v862_v3, 6  ;;  %v353_v27 = vpop.f32.mrf.mxu2 }
  0xf6   :  { %v870_v12 = vsel %vm96_vm1, %v869_v4, %v868_v6  ;;  %v2137_v27 = vld [vmem:[%s2968_s3 + $0xac] sm:$0xf0] }
  0xf7   :  { %v872_v17 = vsel %vm99_vm2, %v871_v9, %v870_v12 }
  0xf9   :  { %v845_v8 = vld.sshfl [vmem:[#allocation1] sm:$0xff pattern:$0x73625140] }
  0xfa   :  { %v849_v10 = vld.sshfl [vmem:[#allocation1 + $0x20] sm:$0xff pattern:$0x73625140]  ;;  %852 = vst [vmem:[#allocation1] ss:$4 sm:$0xff] %v1779_v5  ;;  %v863_v11 = vunpack.c.l.b16 %v845_v8 }
  0xfb   :  { %856 = vst [vmem:[#allocation1 + $0x20] ss:$4 sm:$0xff] %v1780_v7  ;;  %v864_v13 = vunpack.c.l.b16 %v849_v10 }
  0xfc   :  { %v873_v14 = vrot.slane %v863_v11, 5  ;;  %v239_v50 = vpop.f32.mrf.mxu1 }
  0xfd   :  { %v875_v18 = vrot.slane %v864_v13, 4  ;;  %v240_v29 = vadd.f32 %v239_v50, %v151_v35  ;;  %v1923_v35 = vld [vmem:[%s2968_s3 + $0xd0] sm:$0xf0] }
  0xfe   :  { %v874_v22 = vsel %vm102_vm3, %v873_v14, %v872_v17  ;;  %v1937_v14 = vld [vmem:[%s2968_s3 + $0xe0] sm:$0xf]  ;;  %v2145_v17 = vld [vmem:[%s2968_s3 + $0xec] sm:$0xf0] }
  0xff   :  { %v876_v42 = vsel %vm105_vm4, %v875_v18, %v874_v22  ;;  %v355_v55 = vadd.f32 %v351_v15, %v240_v29  ;;  %v2143_v18 = vld [vmem:[%s2968_s3 + $0xe4] sm:$0xf]  ;;  %v1938_v22 = vor.u32 %v2145_v17, %v1937_v14  ;;  %v1929_v15 = vld [vmem:[%s2968_s3 + $0xc8] sm:$0xf]  ;;  %v2136_v29 = vld [vmem:[%s2968_s3 + $0xac] sm:$0xf] }
 0x101   :  { %v853_v28 = vld.sshfl [vmem:[#allocation1] sm:$0xff pattern:$0x73625140]  ;;  %1245 = vmatpush.bf16.msra.mxu1 %v1938_v22 }
 0x102   :  { %v857_v37 = vld.sshfl [vmem:[#allocation1 + $0x20] sm:$0xff pattern:$0x73625140]  ;;  %v865_v38 = vunpack.c.l.b16 %v853_v28  ;;  %940 = vst [vmem:[#allocation1] ss:$4 sm:$0xff] %v1798_v21 }
 0x103   :  { %v866_v41 = vunpack.c.l.b16 %v857_v37  ;;  %945 = vst [vmem:[#allocation1 + $0x20] ss:$4 sm:$0xff] %v1799_v25  ;;  %v1939_v25 = vld [vmem:[%s2968_s3 + $0xf0] sm:$0xf0]  ;;  %v1945_v28 = vld [vmem:[%s2968_s3 + $0xe8] sm:$0xf] }
 0x104   :  { %v877_v43 = vrot.slane %v865_v38, 3  ;;  %v241_v1 = vpop.f32.mrf.mxu1  ;;  %v2146_v37 = vld [vmem:[%s2968_s3 + $0xf4] sm:$0xf0]  ;;  %v2123_v22 = vld [vmem:[%s2968_s3 + $0x44] sm:$0xf] }
 0x105   :  { %v879_v44 = vrot.slane %v866_v41, 2  ;;  %v1942_v41 = vor.u32 %v2143_v18, %v1939_v25  ;;  %v1857_v18 = vld [vmem:[%s2968_s3 + $0x40] sm:$0xf] }
 0x106   :  { %v878_v45 = vsel %vm108_vm5, %v877_v43, %v876_v42  ;;  %v1946_v42 = vor.u32 %v2146_v37, %v1945_v28  ;;  %v2144_v43 = vld [vmem:[%s2968_s3 + $0xec] sm:$0xf]  ;;  %v1859_v28 = vld [vmem:[%s2968_s3 + $0x50] sm:$0xf0]  ;;  %v1865_v37 = vld [vmem:[%s2968_s3 + $0x48] sm:$0xf] }
 0x107   :  { %v880_v31 = vsel %vm111_vm6, %v879_v44, %v878_v45  ;;  %v1947_v44 = vld [vmem:[%s2968_s3 + $0xf8] sm:$0xf0]  ;;  %1258 = vmatpush.bf16.msra.mxu2 %v1942_v41  ;;  %v2126_v41 = vld [vmem:[%s2968_s3 + $0x54] sm:$0xf0] }
 0x108   :  { %v881_v33 = vpack.c.b16 %v880_v31, %v880_v31  ;;  %v1950_v45 = vor.u32 %v2144_v43, %v1947_v44  ;;  %1271 = vmatpush.bf16.msra.mxu3 %v1946_v42  ;;  %v2124_v42 = vld [vmem:[%s2968_s3 + $0x4c] sm:$0xf]  ;;  %v1867_v43 = vld [vmem:[%s2968_s3 + $0x58] sm:$0xf0] }
 0x109   :  { %v941_v46 = vld.sshfl [vmem:[#allocation1] sm:$0xff pattern:$0x73625140] }
 0x10a   :  { %1797 = vmatmul.msk.bf16.vlgmr.msrb.gmra.mxu3 %vm138_vm7, %v881_v33  ;;  %v946_v47 = vld.sshfl [vmem:[#allocation1 + $0x20] sm:$0xff pattern:$0x73625140]  ;;  %949 = vst [vmem:[#allocation1] ss:$4 sm:$0xff] %v1800_v32  ;;  %v972_v39 = vunpack.c.l.b16 %v941_v46  ;;  %1284 = vmatpush.bf16.msrb.mxu0 %v1950_v45  ;;  %v1862_v45 = vor.u32 %v2123_v22, %v1859_v28 }
 0x10b   :  { %953 = vst [vmem:[#allocation1 + $0x20] ss:$4 sm:$0xff] %v1801_v34  ;;  %v973_v40 = vunpack.c.l.b16 %v946_v47  ;;  %v1921_v33 = vld [vmem:[%s2968_s3 + $0xc0] sm:$0xf]  ;;  %v2141_v34 = vld [vmem:[%s2968_s3 + $0xcc] sm:$0xf0] }
 0x10c   :  { %v980_v19 = vrot.slane %v972_v39, 2  ;;  %v2139_v46 = vld [vmem:[%s2968_s3 + $0xc4] sm:$0xf]  ;;  %v1922_v47 = vor.u32 %v2141_v34, %v1921_v33  ;;  %v1870_v33 = vor.u32 %v2124_v42, %v1867_v43  ;;  %v1841_v34 = vld [vmem:[%s2968_s3 + $0x20] sm:$0xf]  ;;  %v2148_v42 = vld [vmem:[%s2969_s5 + $0x8] sm:$0xff] }
 0x10d   :  { %v465_v16 = vpop.f32.mrf.mxu3  ;;  %v981_v23 = vrot.slane %v973_v40, 1  ;;  %v1926_v39 = vor.u32 %v2139_v46, %v1923_v35  ;;  %v2121_v46 = vld [vmem:[%s2968_s3 + $0x2c] sm:$0xf0]  ;;  %v2172_v43 = vld [vmem:[%s2969_s5 + $0xc8] sm:$0xff] }
 0x10e   :  { %v469_v61 = vadd.f32 %v465_v16, %v355_v55  ;;  %v2142_v16 = vld [vmem:[%s2968_s3 + $0xd4] sm:$0xf0]  ;;  %1246 = vmatpush.bf16.msra.mxu1 %v1922_v47  ;;  %v2133_v55 = vld [vmem:[%s2968_s3 + $0x8c] sm:$0xf0]  ;;  %v2119_v47 = vld [vmem:[%s2968_s3 + $0x24] sm:$0xf]  ;;  %v1842_v35 = vor.u32 %v2121_v46, %v1841_v34 }
 0x10f   :  { %v982_v53 = vsel %vm93_vm0, %v981_v23, %v980_v19  ;;  %v1930_v40 = vor.u32 %v2142_v16, %v1929_v15  ;;  %v2135_v19 = vld [vmem:[%s2968_s3 + $0xa4] sm:$0xf]  ;;  %v1907_v23 = vld [vmem:[%s2968_s3 + $0xb0] sm:$0xf0]  ;;  %1259 = vmatpush.bf16.msra.mxu2 %v1926_v39  ;;  %v1849_v16 = vld [vmem:[%s2968_s3 + $0x28] sm:$0xf] }
 0x110   :  { %v1910_v50 = vor.u32 %v2135_v19, %v1907_v23  ;;  %v1843_v15 = vld [vmem:[%s2968_s3 + $0x30] sm:$0xf0]  ;;  %v2122_v39 = vld [vmem:[%s2968_s3 + $0x34] sm:$0xf0]  ;;  %v2117_v19 = vld [vmem:[%s2968_s3 + $0xc] sm:$0xf0] }
 0x111   :  { %v950_v20 = vld.sshfl [vmem:[#allocation1] sm:$0xff pattern:$0x73625140]  ;;  %1272 = vmatpush.bf16.msra.mxu3 %v1930_v40  ;;  %v1846_v40 = vor.u32 %v2119_v47, %v1843_v15  ;;  %v2156_v34 = vld [vmem:[%s2969_s5 + $0x48] sm:$0xff] }
 0x112   :  { %v954_v49 = vld.sshfl [vmem:[#allocation1 + $0x20] sm:$0xff pattern:$0x73625140]  ;;  %957 = vst [vmem:[#allocation1] ss:$4 sm:$0xff] %v1802_v36  ;;  %v974_v52 = vunpack.c.l.b16 %v950_v20  ;;  %v2164_v46 = vld [vmem:[%s2969_s5 + $0x88] sm:$0xff] }
 0x113   :  { %961 = vst [vmem:[#allocation1 + $0x20] ss:$4 sm:$0xff] %v1803_v48  ;;  %v975_v24 = vunpack.c.l.b16 %v954_v49  ;;  %v2140_v48 = vld [vmem:[%s2968_s3 + $0xcc] sm:$0xf]  ;;  %v1931_v20 = vld [vmem:[%s2968_s3 + $0xd8] sm:$0xf0]  ;;  %1260 = vmatpush.bf16.msra.mxu2 %v1910_v50 }
 0x114   :  { %v983_v60 = vsel %vm96_vm1, %v974_v52, %v982_v53  ;;  %v1905_v49 = vld [vmem:[%s2968_s3 + $0xa0] sm:$0xf]  ;;  %v1934_v26 = vor.u32 %v2140_v48, %v1931_v20  ;;  %v2138_v52 = vld [vmem:[%s2968_s3 + $0xb4] sm:$0xf0]  ;;  %v1915_v53 = vld [vmem:[%s2968_s3 + $0xb8] sm:$0xf0]  ;;  %v1850_v48 = vor.u32 %v2122_v39, %v1849_v16 }
 0x115   :  { %v467_v51 = vpop.f32.mrf.mxu3  ;;  %v984_v57 = vrot.slane %v975_v24, 7  ;;  %v1906_v24 = vor.u32 %v2137_v27, %v1905_v49  ;;  %v2120_v20 = vld [vmem:[%s2968_s3 + $0x2c] sm:$0xf]  ;;  %v1851_v49 = vld [vmem:[%s2968_s3 + $0x38] sm:$0xf0]  ;;  %v2155_v47 = vld [vmem:[%s2969_s5 + $0x40] sm:$0xff] }
 0x116   :  { %v1913_v51 = vld [vmem:[%s2968_s3 + $0xa8] sm:$0xf]  ;;  %1285 = vmatpush.bf16.msrb.mxu0 %v1934_v26  ;;  %v1854_v26 = vor.u32 %v2120_v20, %v1851_v49  ;;  %v1825_v27 = vld [vmem:[%s2968_s3] sm:$0xf]  ;;  %v2115_v23 = vld [vmem:[%s2968_s3 + $0x4] sm:$0xf] }
 0x117   :  { %v985_v0 = vsel %vm99_vm2, %v984_v57, %v983_v60  ;;  %v2131_v57 = vld [vmem:[%s2968_s3 + $0x84] sm:$0xf]  ;;  %1247 = vmatpush.bf16.msra.mxu1 %v1906_v24  ;;  %v1826_v24 = vor.u32 %v2117_v19, %v1825_v27  ;;  %v1827_v50 = vld [vmem:[%s2968_s3 + $0x10] sm:$0xf0]  ;;  %v1075_v15 = vld [vmem:[%s2971_s4] sm:$0xf] }
 0x118   :  { %v1077_v16 = vperm.slane %v1075_v15, 0  ;;  %v1080_v39 = vperm.slane %v1075_v15, 3  ;;  %v1078_v27 = vperm.slane %v1075_v15, 1 }
 0x119   :  { %v958_v56 = vld.sshfl [vmem:[#allocation1] sm:$0xff pattern:$0x73625140] }
 0x11a   :  { %v962_v58 = vld.sshfl [vmem:[#allocation1 + $0x20] sm:$0xff pattern:$0x73625140]  ;;  %965 = vst [vmem:[#allocation1] ss:$4 sm:$0xff] %v1804_v30  ;;  %v976_v59 = vunpack.c.l.b16 %v958_v56  ;;  %v1914_v30 = vor.u32 %v2138_v52, %v1913_v51  ;;  %v1918_v56 = vor.u32 %v2136_v29, %v1915_v53  ;;  %v1830_v29 = vor.u32 %v2115_v23, %v1827_v50 }
 0x11b   :  { %969 = vst [vmem:[#allocation1 + $0x20] ss:$4 sm:$0xff] %v1805_v54  ;;  %v977_v62 = vunpack.c.l.b16 %v962_v58  ;;  %v1889_v54 = vld [vmem:[%s2968_s3 + $0x80] sm:$0xf]  ;;  %v1891_v58 = vld [vmem:[%s2968_s3 + $0x90] sm:$0xf0] }
 0x11c   :  { %v986_v63 = vrot.slane %v976_v59, 6  ;;  %v1897_v59 = vld [vmem:[%s2968_s3 + $0x88] sm:$0xf]  ;;  %v1890_v60 = vor.u32 %v2133_v55, %v1889_v54  ;;  %1273 = vmatpush.bf16.msra.mxu3 %v1914_v30  ;;  %v1894_v1 = vor.u32 %v2131_v57, %v1891_v58  ;;  %1286 = vmatpush.bf16.msrb.mxu0 %v1918_v56  ;;  %v2118_v52 = vld [vmem:[%s2968_s3 + $0x14] sm:$0xf0]  ;;  %v1079_v23 = vperm.slane %v1075_v15, 2 }
 0x11d   :  { %v988_v2 = vrot.slane %v977_v62, 5  ;;  %v2132_v62 = vld [vmem:[%s2968_s3 + $0x8c] sm:$0xf]  ;;  %v1833_v51 = vld [vmem:[%s2968_s3 + $0x8] sm:$0xf]  ;;  %v2154_v57 = vld [vmem:[%s2969_s5 + $0x38] sm:$0xff] }
 0x11e   :  { %v987_v3 = vsel %vm102_vm3, %v986_v63, %v985_v0  ;;  %v1899_v63 = vld [vmem:[%s2968_s3 + $0x98] sm:$0xf0]  ;;  %1248 = vmatpush.bf16.msra.mxu1 %v1890_v60  ;;  %1261 = vmatpush.bf16.msra.mxu2 %v1894_v1  ;;  %v1834_v30 = vor.u32 %v2118_v52, %v1833_v51  ;;  %v2116_v53 = vld [vmem:[%s2968_s3 + $0xc] sm:$0xf] }
 0x11f   :  { %v989_v8 = vsel %vm105_vm4, %v988_v2, %v987_v3  ;;  %v1873_v3 = vld [vmem:[%s2968_s3 + $0x60] sm:$0xf]  ;;  %v1835_v54 = vld [vmem:[%s2968_s3 + $0x18] sm:$0xf0] }
 0x120   :  { %v1838_v56 = vor.u32 %v2116_v53, %v1835_v54  ;;  %v2178_v58 = vld [vmem:[%s2969_s5 + $0xf8] sm:$0xff] }
 0x121   :  { %v966_v4 = vld.sshfl [vmem:[#allocation1] sm:$0xff pattern:$0x73625140]  ;;  %v2170_v60 = vld [vmem:[%s2969_s5 + $0xb8] sm:$0xff] }
 0x122   :  { %v970_v5 = vld.sshfl [vmem:[#allocation1 + $0x20] sm:$0xff pattern:$0x73625140]  ;;  %v978_v6 = vunpack.c.l.b16 %v966_v4  ;;  %v2129_v4 = vld [vmem:[%s2968_s3 + $0x6c] sm:$0xf0] }
 0x123   :  { %v979_v7 = vunpack.c.l.b16 %v970_v5  ;;  %v2127_v5 = vld [vmem:[%s2968_s3 + $0x64] sm:$0xf] }
 0x124   :  { %v990_v9 = vrot.slane %v978_v6, 4  ;;  %v1902_v6 = vor.u32 %v2132_v62, %v1899_v63  ;;  %v2177_v62 = vld [vmem:[%s2969_s5 + $0xf0] sm:$0xff] }
 0x125   :  { %v992_v10 = vrot.slane %v979_v7, 3  ;;  %v1875_v7 = vld [vmem:[%s2968_s3 + $0x70] sm:$0xf0] }
 0x126   :  { %v991_v11 = vsel %vm108_vm5, %v990_v9, %v989_v8  ;;  %v1881_v8 = vld [vmem:[%s2968_s3 + $0x68] sm:$0xf]  ;;  %v2130_v9 = vld [vmem:[%s2968_s3 + $0x74] sm:$0xf0]  ;;  %v1878_v14 = vor.u32 %v2127_v5, %v1875_v7  ;;  %1287 = vmatpush.bf16.msrb.mxu0 %v1902_v6  ;;  %v2161_v63 = vld [vmem:[%s2969_s5 + $0x70] sm:$0xff] }
 0x127   :  { %v993_v12 = vsel %vm111_vm6, %v992_v10, %v991_v11  ;;  %v578_v21 = vpop.f32.mrf.mxu0  ;;  %v2128_v11 = vld [vmem:[%s2968_s3 + $0x6c] sm:$0xf]  ;;  %v1882_v17 = vor.u32 %v2130_v9, %v1881_v8  ;;  %v2151_v6 = vld [vmem:[%s2969_s5 + $0x20] sm:$0xff] }
 0x128   :  { %v994_v13 = vpack.c.b16 %v993_v12, %v993_v12  ;;  %v2674_v38 = vadd.f32 %v578_v21, %v469_v61  ;;  %v2134_v61 = vld [vmem:[%s2968_s3 + $0x94] sm:$0xf0]  ;;  %v1883_v12 = vld [vmem:[%s2968_s3 + $0x78] sm:$0xf0]  ;;  %v2125_v21 = vld [vmem:[%s2968_s3 + $0x4c] sm:$0xf0]  ;;  %1262 = vmatpush.bf16.msra.mxu2 %v1878_v14 }
 0x129   :  { %v1898_v2 = vor.u32 %v2134_v61, %v1897_v59  ;;  %v1886_v25 = vor.u32 %v2128_v11, %v1883_v12  ;;  %v1858_v44 = vor.u32 %v2125_v21, %v1857_v18  ;;  %v2162_v59 = vld [vmem:[%s2969_s5 + $0x78] sm:$0xff]  ;;  %v2153_v61 = vld [vmem:[%s2969_s5 + $0x30] sm:$0xff]  ;;  %v2168_v5 = vld [vmem:[%s2969_s5 + $0xa8] sm:$0xff] }
 0x12a   :  { %1822 = vmatmul.msk.bf16.vlgmr.msra.gmra.mxu0 %vm138_vm7, %v994_v13  ;;  %v1874_v13 = vor.u32 %v2129_v4, %v1873_v3  ;;  %v2176_v3 = vld [vmem:[%s2969_s5 + $0xe8] sm:$0xff]  ;;  %v2175_v7 = vld [vmem:[%s2969_s5 + $0xe0] sm:$0xff]  ;;  %v2150_v11 = vld [vmem:[%s2969_s5 + $0x18] sm:$0xff] }
 0x12b   :  { %1274 = vmatpush.bf16.msra.mxu3 %v1898_v2  ;;  %1288 = vmatpush.bf16.msrb.mxu0 %v1886_v25  ;;  %v2152_v2 = vld [vmem:[%s2969_s5 + $0x28] sm:$0xff]  ;;  %v2159_v8 = vld [vmem:[%s2969_s5 + $0x60] sm:$0xff]  ;;  %v2174_v12 = vld [vmem:[%s2969_s5 + $0xd8] sm:$0xff] }
 0x12c   :  { %1249 = vmatpush.bf16.msra.mxu1 %v1874_v13  ;;  %1263 = vmatpush.bf16.msra.mxu2 %v1862_v45  ;;  %v2160_v4 = vld [vmem:[%s2969_s5 + $0x68] sm:$0xff]  ;;  %v2167_v9 = vld [vmem:[%s2969_s5 + $0xa0] sm:$0xff]  ;;  %v2158_v13 = vld [vmem:[%s2969_s5 + $0x58] sm:$0xff] }
 0x12d   :  { %v2149_v14 = vld [vmem:[%s2969_s5 + $0x10] sm:$0xff]  ;;  %v2179_v21 = vld [vmem:[%s2967_s2] ss:$0 sm:$0xff] }
 0x12e   :  { %v2165_v45 = vld [vmem:[%s2969_s5 + $0x90] sm:$0xff] }
 0x12f   :  { %v580_v31 = vpop.f32.mrf.mxu0  ;;  %1275 = vmatpush.bf16.msra.mxu3 %v1882_v17  ;;  %1289 = vmatpush.bf16.msrb.mxu0 %v1870_v33  ;;  %v2173_v17 = vld [vmem:[%s2969_s5 + $0xd0] sm:$0xff]  ;;  %v2171_v33 = vld [vmem:[%s2969_s5 + $0xc0] sm:$0xff] }
 0x130   :  { %v1866_v31 = vor.u32 %v2126_v41, %v1865_v37  ;;  %1250 = vmatpush.bf16.msra.mxu1 %v1858_v44  ;;  %1264 = vmatpush.bf16.msra.mxu2 %v1846_v40  ;;  %v2157_v44 = vld [vmem:[%s2969_s5 + $0x50] sm:$0xff] }
 0x133   :  { %1276 = vmatpush.bf16.msra.mxu3 %v1866_v31  ;;  %1290 = vmatpush.bf16.msrb.mxu0 %v1854_v26  ;;  %v2147_v31 = vld [vmem:[%s2969_s5] sm:$0xff] }
 0x134   :  { %1251 = vmatpush.bf16.msra.mxu1 %v1842_v35  ;;  %1265 = vmatpush.bf16.msra.mxu2 %v1830_v29  ;;  %v2163_v35 = vld [vmem:[%s2969_s5 + $0x80] sm:$0xff] }
 0x137   :  { %1277 = vmatpush.bf16.msra.mxu3 %v1850_v48  ;;  %1291 = vmatpush.bf16.msrb.mxu0 %v1838_v56 }
 0x138   :  { %1252 = vmatpush.bf16.msra.mxu1 %v1826_v24  ;;  %1578 = vmatpush.bf16.msrb.mxu2 %v2162_v59 }
 0x13b   :  { %1278 = vmatpush.bf16.msra.mxu3 %v1834_v30  ;;  %1604 = vmatpush.bf16.msra.mxu0 %v2178_v58 }
 0x13c   :  { %1565 = vmatpush.bf16.msrb.mxu1 %v2154_v57  ;;  %1579 = vmatpush.bf16.msrb.mxu2 %v2161_v63  ;;  %v2180_v63 = vld [vmem:[%s2970_s6] ss:$0 sm:$0xff] }
 0x13f   :  { %1591 = vmatpush.bf16.msrb.mxu3 %v2170_v60  ;;  %1605 = vmatpush.bf16.msra.mxu0 %v2177_v62 }
 0x140   :  { %1566 = vmatpush.bf16.msrb.mxu1 %v2153_v61  ;;  %1580 = vmatpush.bf16.msrb.mxu2 %v2160_v4 }
 0x143   :  { %1606 = vmatpush.bf16.msra.mxu0 %v2176_v3 }
 0x144   :  { %1567 = vmatpush.bf16.msrb.mxu1 %v2152_v2  ;;  %1581 = vmatpush.bf16.msrb.mxu2 %v2159_v8 }
 0x147   :  { %1607 = vmatpush.bf16.msra.mxu0 %v2175_v7 }
 0x148   :  { %1568 = vmatpush.bf16.msrb.mxu1 %v2151_v6  ;;  %1582 = vmatpush.bf16.msrb.mxu2 %v2158_v13 }
 0x14b   :  { %1608 = vmatpush.bf16.msra.mxu0 %v2174_v12 }
 0x14c   :  { %1569 = vmatpush.bf16.msrb.mxu1 %v2150_v11  ;;  %1583 = vmatpush.bf16.msrb.mxu2 %v2157_v44 }
 0x14f   :  { %1609 = vmatpush.bf16.msra.mxu0 %v2173_v17 }
 0x150   :  { %1570 = vmatpush.bf16.msrb.mxu1 %v2149_v14  ;;  %1584 = vmatpush.bf16.msrb.mxu2 %v2156_v34 }
 0x153   :  { %1610 = vmatpush.bf16.msra.mxu0 %v2172_v43 }
 0x154   :  { %1571 = vmatpush.bf16.msrb.mxu1 %v2148_v42  ;;  %1585 = vmatpush.bf16.msrb.mxu2 %v2155_v47 }
 0x156   :  { %v2702_v36 = vpop.f32.mrf.mxu1 }
 0x157   :  { %1611 = vmatpush.bf16.msra.mxu0 %v2171_v33 }
 0x158   :  { %1572 = vmatpush.bf16.msrb.mxu1 %v2147_v31 }
 0x15e   :  { %v693_v10 = vpop.f32.mrf.mxu1 }
 0x15f   :  { %v695_v10 = vadd.f32 %v2702_v36, %v2674_v38  ;;  %v2166_v38 = vld [vmem:[%s2969_s5 + $0x98] sm:$0xff] }
 0x16d   :  { %v2682_v32 = vpop.f32.mrf.mxu2 }
 0x16e   :  { %v809_v36 = vadd.f32 %v2682_v32, %v695_v10 }
 0x175   :  { %v807_v0 = vpop.f32.mrf.mxu2 }
 0x176   :  { %v2169_v0 = vld [vmem:[%s2969_s5 + $0xb0] sm:$0xff] }
 0x177   :  { %1592 = vmatpush.bf16.msrb.mxu3 %v2169_v0 }
 0x17b   :  { %1593 = vmatpush.bf16.msrb.mxu3 %v2168_v5 }
 0x17f   :  { %1594 = vmatpush.bf16.msrb.mxu3 %v2167_v9 }
 0x183   :  { %1595 = vmatpush.bf16.msrb.mxu3 %v2166_v38 }
 0x187   :  { %1596 = vmatpush.bf16.msrb.mxu3 %v2165_v45 }
 0x18b   :  { %1597 = vmatpush.bf16.msrb.mxu3 %v2164_v46 }
 0x18d   :  { %v918_v55 = vpop.f32.mrf.mxu3 }
 0x18e   :  { %v922_v18 = vadd.f32 %v918_v55, %v809_v36 }
 0x18f   :  { %1598 = vmatpush.bf16.msrb.mxu3 %v2163_v35 }
 0x195   :  { %v920_v1 = vpop.f32.mrf.mxu3 }
 0x1a7   :  { %v1031_v22 = vpop.f32.mrf.mxu0 }
 0x1a8   :  { %v1035_v32 = vadd.f32 %v1031_v22, %v922_v18 }
 0x1aa   :  { %v1040_v25 = vadd.f32 %v2179_v21, %v1035_v32 }
 0x1ac   :  { %v1041_v28 = vmax.f32 %v1040_v25, 0.0 }
 0x1ae   :  { %v1042_v37 = vpack.c.bf16 %v1041_v28, %v1041_v28 }
 0x1af   :  { %v1033_v41 = vpop.f32.mrf.mxu0 }
 0x1b0   :  { %1253 = vmatmul.bf16.vlgmr.msra.gmra.mxu1 %v1042_v37  ;;  %1266 = vmatmul.bf16.vlgmr.msra.gmra.mxu2 %v1042_v37 }
 0x1b1   :  { %1279 = vmatmul.bf16.vlgmr.msra.gmra.mxu3 %v1042_v37  ;;  %1292 = vmatmul.bf16.vlgmr.msrb.gmra.mxu0 %v1042_v37 }
 0x22d   :  { %v1254_v40 = vpop.f32.mrf.mxu1 }
 0x22e   :  { %v1255_v48 = vadd.f32 %v1254_v40, %v1077_v16  ;;  %v1293_v20 = vpop.f32.mrf.mxu0 }
 0x22f   :  { %v1294_v49 = vadd.f32 %v1293_v20, %v1080_v39 }
 0x230   :  { %v1297_v26 = vmax.f32 %v1255_v48, 0.0 }
 0x231   :  { %v1300_v19 = vmax.f32 %v1294_v49, 0.0 }
 0x232   :  { %v1301_v24 = vpack.c.bf16 %v1297_v26, %v1297_v26 }
 0x233   :  { %v1304_v50 = vpack.c.bf16 %v1300_v19, %v1300_v19  ;;  %v1267_v51 = vpop.f32.mrf.mxu2 }
 0x234   :  { %v1268_v52 = vadd.f32 %v1267_v51, %v1078_v27  ;;  %v1280_v29 = vpop.f32.mrf.mxu3  ;;  %1573 = vmatmul.bf16.vlgmr.msrb.gmra.mxu1 %v1301_v24 }
 0x235   :  { %v1281_v30 = vadd.f32 %v1280_v29, %v1079_v23  ;;  %1612 = vmatmul.bf16.vlgmr.msra.gmra.mxu0 %v1304_v50  ;;  %v1256_v53 = vpop.f32.mrf.mxu1 }
 0x236   :  { %v1298_v54 = vmax.f32 %v1268_v52, 0.0  ;;  %v1295_v55 = vpop.f32.mrf.mxu0 }
 0x237   :  { %v1299_v56 = vmax.f32 %v1281_v30, 0.0 }
 0x238   :  { %v1302_v57 = vpack.c.bf16 %v1298_v54, %v1298_v54 }
 0x239   :  { %v1303_v58 = vpack.c.bf16 %v1299_v56, %v1299_v56 }
 0x23a   :  { %1586 = vmatmul.bf16.vlgmr.msrb.gmra.mxu2 %v1302_v57 }
 0x23b   :  { %1599 = vmatmul.bf16.vlgmr.msrb.gmra.mxu3 %v1303_v58  ;;  %v1269_v59 = vpop.f32.mrf.mxu2 }
 0x23c   :  { %v1282_v60 = vpop.f32.mrf.mxu3 }
 0x2b1   :  { %v1574_v61 = vpop.f32.mrf.mxu1 }
 0x2b2   :  { %v1613_v62 = vpop.f32.mrf.mxu0  ;;  %v1575_v2 = vadd.f32 %v2180_v63, %v1574_v61 }
 0x2b9   :  { %v1576_v0 = vpop.f32.mrf.mxu1 }
 0x2ba   :  { %v1615_v1 = vpop.f32.mrf.mxu0 }
 0x2bd   :  { %v1587_v3 = vpop.f32.mrf.mxu2 }
 0x2be   :  { %v1588_v4 = vadd.f32 %v1587_v3, %v1575_v2  ;;  %v1600_v5 = vpop.f32.mrf.mxu3 }
 0x2c0   :  { %v1601_v6 = vadd.f32 %v1600_v5, %v1588_v4 }
 0x2c2   :  { %v1614_v7 = vadd.f32 %v1613_v62, %v1601_v6 }
 0x2c4   :  { %1617 = vst [vmem:[%s2972_s7] sm:$0xff] %v1614_v7 }
 0x2c5   :  { %v1589_v8 = vpop.f32.mrf.mxu2 }
 0x2c6   :  { %v1602_v9 = vpop.f32.mrf.mxu3 }

</bundles_post_ra>
